<compile_context>
chip_gen: v6e
topology: v6e:2x2x1
jax: 0.10.0
libtpu: 0.0.40
codegen_flags: <defaults>
</compile_context>

<pallas_src>
import functools

import jax
import jax.numpy as jnp
from jax.experimental import pallas as pl
from jax.experimental.pallas import tpu as pltpu

N_ATOMS = 512     # total atoms across the batch (lane axis)
N_SYSTEMS = 32    # molecules/systems in the batch

# Deterministic "dataset_statistic" (training_dataset_statistics) values.
E_I_MEAN = -0.5
E_I_STDDEV = 0.3


def _postprocessing_kernel(e_ref, q_ref, idx_row_ref, idx_col_ref, qtot_ref,
                           e_out_ref, q_out_ref, esys_ref, *,
                           e_i_mean, e_i_stddev):
    # e_ref       : VMEM f32[1, NA]  per-atom energy (normalized)
    # q_ref       : VMEM f32[1, NA]  per-atom charge
    # idx_row_ref : VMEM i32[1, NA]  atomic_subsystem_indices (lane-oriented)
    # idx_col_ref : VMEM i32[NA, 1]  same indices (sublane-oriented)
    # qtot_ref    : VMEM f32[1, NS]  per-system total charge
    # e_out_ref   : VMEM f32[1, NA]  scaled per-atom energy
    # q_out_ref   : VMEM f32[1, NA]  charge-conserving corrected per-atom charge
    # esys_ref    : VMEM f32[1, NS]  per-system energy
    e = e_ref[...]
    q = q_ref[...]
    idx_row = idx_row_ref[...]
    idx_col = idx_col_ref[...]
    qtot = qtot_ref[...]

    na = e.shape[1]
    ns = qtot.shape[1]

    # ---- PerAtomEnergy: undo normalization (compile-time constants) ----
    e_scaled = e * e_i_stddev + e_i_mean                           # (1, NA)

    # ---- one-hot membership matrices, both built in MXU-native orientation
    # onehot_nm[a, m] = 1.0 iff atom a belongs to system m         (NA, NS)
    # onehot_mn[m, a] = 1.0 iff atom a belongs to system m         (NS, NA)
    # Out-of-range indices produce all-zero rows/columns (atom dropped).
    lane_iota = jax.lax.broadcasted_iota(jnp.int32, (na, ns), 1)
    onehot_nm = (idx_col == lane_iota).astype(jnp.float32)         # (NA, NS)
    sub_iota = jax.lax.broadcasted_iota(jnp.int32, (ns, na), 0)
    onehot_mn = (sub_iota == idx_row).astype(jnp.float32)          # (NS, NA)

    # ---- one MXU matmul does all three segment reductions ----
    # payload rows: [scaled energy, charge, ones]                  (3, NA)
    payload = jnp.concatenate(
        [e_scaled, q, jnp.ones((1, na), jnp.float32)], axis=0)
    sums = jnp.dot(payload, onehot_nm,
                   preferred_element_type=jnp.float32,
                   precision=jax.lax.Precision.HIGHEST)            # (3, NS)

    e_sys = sums[0:1, :]                                           # (1, NS)
    q_sys = sums[1:2, :]                                           # (1, NS)
    counts = jnp.maximum(sums[2:3, :], 1.0)                        # >=1 guard

    # ---- PerAtomCharge: charge conservation ----
    corr = (qtot - q_sys) / counts                                 # (1, NS)
    # broadcast each system's correction back onto its atoms (second matmul)
    corr_atom = jnp.dot(corr, onehot_mn,
                        preferred_element_type=jnp.float32,
                        precision=jax.lax.Precision.HIGHEST)       # (1, NA)

    # single dense full-block stores
    e_out_ref[...] = e_scaled
    q_out_ref[...] = q + corr_atom
    esys_ref[...] = e_sys


def postprocessing_forward(per_atom_energy, per_atom_charge,
                           atomic_subsystem_indices, per_system_total_charge,
                           e_i_mean=E_I_MEAN, e_i_stddev=E_I_STDDEV):
    """PostProcessing.forward over a flat batch of n_atoms atoms / n_systems systems."""
    e = jnp.ravel(per_atom_energy).astype(jnp.float32)
    q = jnp.ravel(per_atom_charge).astype(jnp.float32)
    idx = jnp.ravel(atomic_subsystem_indices).astype(jnp.int32)
    qtot = jnp.ravel(per_system_total_charge).astype(jnp.float32)

    n_atoms = e.shape[0]
    n_systems = qtot.shape[0]
    if q.shape[0] != n_atoms or idx.shape[0] != n_atoms:
        raise ValueError("per-atom input shape mismatch")

    # free metadata-level reshapes to lane-dense / column orientations
    e_row = e.reshape(1, n_atoms)
    q_row = q.reshape(1, n_atoms)
    idx_row = idx.reshape(1, n_atoms)
    idx_col = idx.reshape(n_atoms, 1)
    qtot_row = qtot.reshape(1, n_systems)

    kernel = functools.partial(
        _postprocessing_kernel,
        e_i_mean=float(e_i_mean),
        e_i_stddev=float(e_i_stddev))

    flops = (2 * 3 * n_atoms * n_systems       # segment-sum matmul
             + 2 * n_atoms * n_systems         # correction broadcast matmul
             + 8 * n_atoms)                    # elementwise
    bytes_accessed = 4 * (4 * n_atoms + n_systems      # inputs (e, q, idx x2, qtot)
                          + 2 * n_atoms + n_systems)   # outputs

    # Single grid step: whole arrays land in VMEM once (they are tiny), one set
    # of DMAs in, three dense full-block stores out.
    e_out, q_out, e_sys = pl.pallas_call(
        kernel,
        out_shape=(
            jax.ShapeDtypeStruct((1, n_atoms), jnp.float32),
            jax.ShapeDtypeStruct((1, n_atoms), jnp.float32),
            jax.ShapeDtypeStruct((1, n_systems), jnp.float32),
        ),
        cost_estimate=pl.CostEstimate(
            flops=flops, transcendentals=0, bytes_accessed=bytes_accessed),
    )(e_row, q_row, idx_row, idx_col, qtot_row)

    # back to PyTorch/modelforge column conventions (pure metadata reshapes)
    return {
        "per_atom_energy": e_out.reshape(n_atoms, 1),
        "per_system_energy": e_sys.reshape(n_systems, 1),
        "per_atom_charge": q_out.reshape(n_atoms, 1),
    }


# ---------------------------------------------------------------------------
# pure-JAX reference
# ---------------------------------------------------------------------------
def _reference(e, q, idx, qtot, n_systems):
    e_scaled = e * E_I_STDDEV + E_I_MEAN
    e_sys = jax.ops.segment_sum(e_scaled, idx, num_segments=n_systems)
    q_sys = jax.ops.segment_sum(q, idx, num_segments=n_systems)
    counts = jax.ops.segment_sum(jnp.ones_like(q), idx, num_segments=n_systems)
    corr = (qtot - q_sys) / counts
    return e_scaled, e_sys, q + corr[idx]


if __name__ == "__main__":
    key = jax.random.PRNGKey(0)
    k1, k2, k3, k4 = jax.random.split(key, 4)

    per_atom_energy = jax.random.normal(k1, (N_ATOMS,), dtype=jnp.float32)
    per_atom_charge = 0.1 * jax.random.normal(k2, (N_ATOMS,), dtype=jnp.float32)

    # 32 systems x 16 atoms, atom order shuffled across the whole batch
    base = jnp.repeat(jnp.arange(N_SYSTEMS, dtype=jnp.int32),
                      N_ATOMS // N_SYSTEMS)
    atomic_subsystem_indices = jax.random.permutation(k3, base)

    per_system_total_charge = jax.random.randint(
        k4, (N_SYSTEMS,), -1, 2).astype(jnp.float32)

    out = postprocessing_forward(per_atom_energy, per_atom_charge,
                                 atomic_subsystem_indices,
                                 per_system_total_charge)
    jax.block_until_ready(out)

    ref_e, ref_esys, ref_q = _reference(per_atom_energy, per_atom_charge,
                                        atomic_subsystem_indices,
                                        per_system_total_charge, N_SYSTEMS)

    assert jnp.allclose(out["per_atom_energy"][:, 0], ref_e, atol=1e-5)
    assert jnp.allclose(out["per_system_energy"][:, 0], ref_esys, atol=1e-4)
    assert jnp.allclose(out["per_atom_charge"][:, 0], ref_q, atol=1e-5)

    print("KERNEL_OK")
</pallas_src>

<mosaic_0001>
module attributes {stable_mosaic.version = 11 : i64} {
  func.func @_postprocessing_kernel(%arg0: memref<1x512xf32, #tpu.memory_space<vmem>>, %arg1: memref<1x512xf32, #tpu.memory_space<vmem>>, %arg2: memref<1x512xi32, #tpu.memory_space<vmem>>, %arg3: memref<512x1xi32, #tpu.memory_space<vmem>>, %arg4: memref<1x32xf32, #tpu.memory_space<vmem>>, %arg5: memref<1x512xf32, #tpu.memory_space<vmem>>, %arg6: memref<1x512xf32, #tpu.memory_space<vmem>>, %arg7: memref<1x32xf32, #tpu.memory_space<vmem>>) attributes {dimension_semantics = [], scalar_prefetch = 0 : i64, scratch_operands = 0 : i64, tpu.core_type = #tpu.core_type<tc>} {
    %c0 = arith.constant 0 : index
    %c0_0 = arith.constant 0 : index
    %0 = vector.load %arg0[%c0, %c0_0] : memref<1x512xf32, #tpu.memory_space<vmem>>, vector<1x512xf32>
    %c0_1 = arith.constant 0 : index
    %c0_2 = arith.constant 0 : index
    %1 = vector.load %arg1[%c0_1, %c0_2] : memref<1x512xf32, #tpu.memory_space<vmem>>, vector<1x512xf32>
    %c0_3 = arith.constant 0 : index
    %c0_4 = arith.constant 0 : index
    %2 = vector.load %arg2[%c0_3, %c0_4] : memref<1x512xi32, #tpu.memory_space<vmem>>, vector<1x512xi32>
    %c0_5 = arith.constant 0 : index
    %c0_6 = arith.constant 0 : index
    %3 = vector.load %arg3[%c0_5, %c0_6] : memref<512x1xi32, #tpu.memory_space<vmem>>, vector<512x1xi32>
    %c0_7 = arith.constant 0 : index
    %c0_8 = arith.constant 0 : index
    %4 = vector.load %arg4[%c0_7, %c0_8] : memref<1x32xf32, #tpu.memory_space<vmem>>, vector<1x32xf32>
    %cst = arith.constant 3.000000e-01 : f32
    %5 = vector.broadcast %cst : f32 to vector<1x512xf32>
    %6 = arith.mulf %0, %5 : vector<1x512xf32>
    %cst_9 = arith.constant -5.000000e-01 : f32
    %7 = vector.broadcast %cst_9 : f32 to vector<1x512xf32>
    %8 = arith.addf %6, %7 : vector<1x512xf32>
    %9 = tpu.iota {dimensions = array<i32: 1>} : vector<512x32xi32>
    %10 = vector.broadcast %3 : vector<512x1xi32> to vector<512x32xi32>
    %11 = arith.cmpi eq, %10, %9 : vector<512x32xi32>
    %12 = arith.extui %11 : vector<512x32xi1> to vector<512x32xi32>
    %13 = arith.sitofp %12 : vector<512x32xi32> to vector<512x32xf32>
    %14 = tpu.iota {dimensions = array<i32: 0>} : vector<32x512xi32>
    %15 = vector.broadcast %2 : vector<1x512xi32> to vector<32x512xi32>
    %16 = arith.cmpi eq, %14, %15 : vector<32x512xi32>
    %17 = arith.extui %16 : vector<32x512xi1> to vector<32x512xi32>
    %18 = arith.sitofp %17 : vector<32x512xi32> to vector<32x512xf32>
    %cst_10 = arith.constant 1.000000e+00 : f32
    %19 = vector.broadcast %cst_10 : f32 to vector<1x512xf32>
    %20 = tpu.concatenate %8, %1, %19 in 0 : vector<1x512xf32>, vector<1x512xf32>, vector<1x512xf32> -> vector<3x512xf32>
    %cst_11 = arith.constant dense<0.000000e+00> : vector<3x32xf32>
    %21 = tpu.matmul %20, %13, %cst_11 {dimension_numbers = #tpu.dot_dimension_numbers<[1], [0], [0], [1], [0, 0, 1, 1], [], []>, precision = #tpu.contract_precision<fp32>} : vector<3x512xf32>, vector<512x32xf32>, vector<3x32xf32> -> vector<3x32xf32>
    %22 = vector.extract_strided_slice %21 {offsets = [0, 0], sizes = [1, 32], strides = [1, 1]} : vector<3x32xf32> to vector<1x32xf32>
    %23 = vector.extract_strided_slice %21 {offsets = [1, 0], sizes = [1, 32], strides = [1, 1]} : vector<3x32xf32> to vector<1x32xf32>
    %24 = vector.extract_strided_slice %21 {offsets = [2, 0], sizes = [1, 32], strides = [1, 1]} : vector<3x32xf32> to vector<1x32xf32>
    %cst_12 = arith.constant 1.000000e+00 : f32
    %25 = vector.broadcast %cst_12 : f32 to vector<1x32xf32>
    %26 = arith.maximumf %24, %25 : vector<1x32xf32>
    %27 = arith.subf %4, %23 : vector<1x32xf32>
    %28 = arith.divf %27, %26 : vector<1x32xf32>
    %cst_13 = arith.constant dense<0.000000e+00> : vector<1x512xf32>
    %29 = tpu.matmul %28, %18, %cst_13 {dimension_numbers = #tpu.dot_dimension_numbers<[1], [0], [0], [1], [0, 0, 1, 1], [], []>, precision = #tpu.contract_precision<fp32>} : vector<1x32xf32>, vector<32x512xf32>, vector<1x512xf32> -> vector<1x512xf32>
    %c0_14 = arith.constant 0 : index
    %c0_15 = arith.constant 0 : index
    %30 = vector.load %arg5[%c0_14, %c0_15] : memref<1x512xf32, #tpu.memory_space<vmem>>, vector<1x512xf32>
    tpu.vector_store %arg5[%c0_14, %c0_15], %8 {strides = array<i32>} : memref<1x512xf32, #tpu.memory_space<vmem>>, vector<1x512xf32>,
    %31 = arith.addf %1, %29 : vector<1x512xf32>
    %c0_16 = arith.constant 0 : index
    %c0_17 = arith.constant 0 : index
    %32 = vector.load %arg6[%c0_16, %c0_17] : memref<1x512xf32, #tpu.memory_space<vmem>>, vector<1x512xf32>
    tpu.vector_store %arg6[%c0_16, %c0_17], %31 {strides = array<i32>} : memref<1x512xf32, #tpu.memory_space<vmem>>, vector<1x512xf32>,
    %c0_18 = arith.constant 0 : index
    %c0_19 = arith.constant 0 : index
    %33 = vector.load %arg7[%c0_18, %c0_19] : memref<1x32xf32, #tpu.memory_space<vmem>>, vector<1x32xf32>
    tpu.vector_store %arg7[%c0_18, %c0_19], %22 {strides = array<i32>} : memref<1x32xf32, #tpu.memory_space<vmem>>, vector<1x32xf32>,
    return
  }
}

</mosaic_0001>

<bundles_post_ra>
// kernel: tpu_custom_call.1
= control target key start
LH: loop header
LB: loop body
LE: loop exit
PB: predicated region body
PF: predicated region fallthrough
CT: control target
= control target key end

     0   :  { %13 = vsyncpa [#allocation3], 0  ;;  %v4349_v2 = vmov 0   ;;  %s7163_s0 = inlined_call_operand.vmem [shape: f32[1,512], index: 0, kind: input, shape index: {}]   ;;  %s7164_s1 = inlined_call_operand.vmem [shape: f32[1,512], index: 1, kind: input, shape index: {}]   ;;  %s7165_s2 = inlined_call_operand.vmem [shape: s32[1,512], index: 2, kind: input, shape index: {}]   ;;  %s7166_s3 = inlined_call_operand.vmem [shape: s32[512,1], index: 3, kind: input, shape index: {}]   ;;  %s7167_s4 = inlined_call_operand.vmem [shape: f32[1,32], index: 4, kind: input, shape index: {}]   ;;  %s7168_s5 = inlined_call_operand.hbm [shape: f32[1,512], index: 5, kind: output, shape index: {0}]   ;;  %s7169_s6 = inlined_call_operand.hbm [shape: f32[1,512], index: 6, kind: output, shape index: {1}]   ;;  %s7170_s7 = inlined_call_operand.hbm [shape: f32[1,32], index: 7, kind: output, shape index: {2}]  }
   0x1   :  { %v59_v0 = vld [vmem:[%s7166_s3 + $0xf8] sm:$0xff]  ;;  %v58_v1 = vld [vmem:[%s7166_s3 + $0xf0] sm:$0xff]  ;;  %4281 = vset.pattern.permute.xlu1 %v4349_v2  ;;  %4280 = vset.pattern.permute.xlu0 %v4349_v2  ;;  %v57_v5 = vld [vmem:[%s7166_s3 + $0xe8] sm:$0xff] }
   0x2   :  { %191 = vperm.xlu0 %4280, %v59_v0   ;;  %188 = vperm.xlu1 %4281, %v58_v1   ;;  %v43_v3 = vld [vmem:[%s7166_s3 + $0x78] sm:$0xff]  ;;  %v42_v4 = vld [vmem:[%s7166_s3 + $0x70] sm:$0xff]  ;;  %v41_v6 = vld [vmem:[%s7166_s3 + $0x68] sm:$0xff] }
   0x3   :  { %v56_v7 = vld [vmem:[%s7166_s3 + $0xe0] sm:$0xff]  ;;  %v55_v9 = vld [vmem:[%s7166_s3 + $0xd8] sm:$0xff]  ;;  %v54_v11 = vld [vmem:[%s7166_s3 + $0xd0] sm:$0xff] }
   0x4   :  { %v40_v8 = vld [vmem:[%s7166_s3 + $0x60] sm:$0xff]  ;;  %v39_v10 = vld [vmem:[%s7166_s3 + $0x58] sm:$0xff]  ;;  %v38_v12 = vld [vmem:[%s7166_s3 + $0x50] sm:$0xff] }
   0x6   :  { %143 = vperm.xlu0 %4280, %v43_v3   ;;  %140 = vperm.xlu1 %4281, %v42_v4  }
   0xa   :  { %185 = vperm.xlu0 %4280, %v57_v5   ;;  %137 = vperm.xlu1 %4281, %v41_v6  }
   0xe   :  { %182 = vperm.xlu0 %4280, %v56_v7   ;;  %134 = vperm.xlu1 %4281, %v40_v8  }
  0x12   :  { %179 = vperm.xlu0 %4280, %v55_v9   ;;  %131 = vperm.xlu1 %4281, %v39_v10  }
  0x13   :  { %14 = vsyncpa [#allocation5], 0  ;;  %v53_v13 = vld [vmem:[%s7166_s3 + $0xc8] sm:$0xff]  ;;  %v52_v15 = vld [vmem:[%s7166_s3 + $0xc0] sm:$0xff]  ;;  %v7173_v23 = vlaneseq  ;;  %vm7191_vm0 = vcmask 1040384   ;;  %vm7199_vm1 = vcmask 1041408  }
  0x14   :  { %v37_v14 = vld [vmem:[%s7166_s3 + $0x48] sm:$0xff]  ;;  %v36_v16 = vld [vmem:[%s7166_s3 + $0x40] sm:$0xff]  ;;  %v51_v17 = vld [vmem:[%s7166_s3 + $0xb8] sm:$0xff] }
  0x15   :  { %v35_v18 = vld [vmem:[%s7166_s3 + $0x38] sm:$0xff]  ;;  %v50_v19 = vld [vmem:[%s7166_s3 + $0xb0] sm:$0xff]  ;;  %v49_v21 = vld [vmem:[%s7166_s3 + $0xa8] sm:$0xff]  ;;  %v4472_v28 = vshrl.u32 %v7173_v23, 7 }
  0x16   :  { %176 = vperm.xlu0 %4280, %v54_v11   ;;  %128 = vperm.xlu1 %4281, %v38_v12   ;;  %v34_v20 = vld [vmem:[%s7166_s3 + $0x30] sm:$0xff]  ;;  %v33_v22 = vld [vmem:[%s7166_s3 + $0x28] sm:$0xff]  ;;  %v48_v24 = vld [vmem:[%s7166_s3 + $0xa0] sm:$0xff] }
  0x17   :  { %v32_v25 = vld [vmem:[%s7166_s3 + $0x20] sm:$0xff]  ;;  %7362 = vst [vmem:[#allocation9_spill] sm:$0xff] %v4472_v28  ;;  %v4477_v30 = vsub.s32 1, %v4472_v28  ;;  %v47_v31 = vld [vmem:[%s7166_s3 + $0x98] sm:$0xff]  ;;  %v46_v37 = vld [vmem:[%s7166_s3 + $0x90] sm:$0xff] }
  0x18   :  { %v25_v26 = vld [vmem:[%s7163_s0] sm:$0xf]  ;;  %v31_v32 = vld [vmem:[%s7166_s3 + $0x18] sm:$0xff]  ;;  %v30_v38 = vld [vmem:[%s7166_s3 + $0x10] sm:$0xff] }
  0x19   :  { %v93_v27 = vmul.f32 0.3, %v25_v26  ;;  %7364 = vst [vmem:[#allocation11_spill] sm:$0xff] %v4477_v30  ;;  %v4488_v33 = vld [vmem:[%s7164_s1] sm:$0xf]  ;;  %v45_v42 = vld [vmem:[%s7166_s3 + $0x88] sm:$0xff] }
  0x1a   :  { %173 = vperm.xlu0 %4280, %v53_v13   ;;  %125 = vperm.xlu1 %4281, %v37_v14   ;;  %7365 = vst [vmem:[#allocation12_spill] sm:$0xff] %v4488_v33  ;;  %v579_v35 = vrot.slane %v4488_v33, %v4477_v30  ;;  %v29_v43 = vld [vmem:[%s7166_s3 + $0x8] sm:$0xff]  ;;  %v44_v46 = vld [vmem:[%s7166_s3 + $0x80] sm:$0xff]  ;;  %v91_v49 = vld [vmem:[%s7166_s3 + $0x1f8] sm:$0xff] }
  0x1b   :  { %v4474_v29 = vadd.f32 -0.5, %v93_v27  ;;  %v28_v47 = vld [vmem:[%s7166_s3] sm:$0xff]  ;;  %v75_v50 = vld [vmem:[%s7166_s3 + $0x178] sm:$0xff]  ;;  %v90_v51 = vld [vmem:[%s7166_s3 + $0x1f0] sm:$0xff] }
  0x1c   :  { %v74_v52 = vld [vmem:[%s7166_s3 + $0x170] sm:$0xff]  ;;  %v89_v53 = vld [vmem:[%s7166_s3 + $0x1e8] sm:$0xff]  ;;  %v88_v55 = vld [vmem:[%s7166_s3 + $0x1e0] sm:$0xff] }
  0x1d   :  { %7363 = vst [vmem:[#allocation10_spill] sm:$0xff] %v4474_v29  ;;  %v558_v34 = vrot.slane %v4474_v29, %v4477_v30  ;;  %v73_v54 = vld [vmem:[%s7166_s3 + $0x168] sm:$0xff]  ;;  %v72_v56 = vld [vmem:[%s7166_s3 + $0x160] sm:$0xff]  ;;  %v87_v57 = vld [vmem:[%s7166_s3 + $0x1d8] sm:$0xff] }
  0x1e   :  { %170 = vperm.xlu0 %4280, %v52_v15   ;;  %122 = vperm.xlu1 %4281, %v36_v16   ;;  %v71_v58 = vld [vmem:[%s7166_s3 + $0x158] sm:$0xff]  ;;  %v86_v59 = vld [vmem:[%s7166_s3 + $0x1d0] sm:$0xff]  ;;  %v85_v61 = vld [vmem:[%s7166_s3 + $0x1c8] sm:$0xff]  ;;  %v4615_v15 = vand.u32 127, %v7173_v23 }
  0x1f   :  { %v594_v36 = vsel %vm7191_vm0, %v558_v34, %v579_v35  ;;  %v70_v60 = vld [vmem:[%s7166_s3 + $0x150] sm:$0xff]  ;;  %v69_v62 = vld [vmem:[%s7166_s3 + $0x148] sm:$0xff]  ;;  %v84_v63 = vld [vmem:[%s7166_s3 + $0x1c0] sm:$0xff] }
  0x20   :  { %v599_v39 = vsel %vm7199_vm1, %v594_v36, 1.0  ;;  %v68_v0 = vld [vmem:[%s7166_s3 + $0x140] sm:$0xff]  ;;  %v83_v1 = vld [vmem:[%s7166_s3 + $0x1b8] sm:$0xff]  ;;  %v82_v3 = vld [vmem:[%s7166_s3 + $0x1b0] sm:$0xff] }
  0x21   :  { %v4502_v40 = vand.u32 4294901760, %v599_v39  ;;  %v67_v2 = vld [vmem:[%s7166_s3 + $0x138] sm:$0xff]  ;;  %v66_v4 = vld [vmem:[%s7166_s3 + $0x130] sm:$0xff]  ;;  %v81_v5 = vld [vmem:[%s7166_s3 + $0x1a8] sm:$0xff] }
  0x22   :  { %167 = vperm.xlu0 %4280, %v51_v17   ;;  %119 = vperm.xlu1 %4281, %v35_v18   ;;  %v65_v6 = vld [vmem:[%s7166_s3 + $0x128] sm:$0xff]  ;;  %v80_v7 = vld [vmem:[%s7166_s3 + $0x1a0] sm:$0xff]  ;;  %v79_v9 = vld [vmem:[%s7166_s3 + $0x198] sm:$0xff] }
  0x23   :  { %7366 = vst [vmem:[#allocation13_spill] sm:$0xff] %v4502_v40  ;;  %v4505_v41 = vsub.f32 %v599_v39, %v4502_v40  ;;  %939 = vmatprep.mubr.f32.mxu1 %v4502_v40  ;;  %v64_v8 = vld [vmem:[%s7166_s3 + $0x120] sm:$0xff]  ;;  %v63_v10 = vld [vmem:[%s7166_s3 + $0x118] sm:$0xff]  ;;  %v78_v11 = vld [vmem:[%s7166_s3 + $0x190] sm:$0xff] }
  0x24   :  { %v62_v12 = vld [vmem:[%s7166_s3 + $0x110] sm:$0xff]  ;;  %v77_v13 = vld [vmem:[%s7166_s3 + $0x188] sm:$0xff]  ;;  %v76_v16 = vld [vmem:[%s7166_s3 + $0x180] sm:$0xff] }
  0x25   :  { %v7182_v44 = vand.u32 4294901760, %v4505_v41  ;;  %v61_v14 = vld [vmem:[%s7166_s3 + $0x108] sm:$0xff]  ;;  %v60_v17 = vld [vmem:[%s7166_s3 + $0x100] sm:$0xff] }
  0x26   :  { %164 = vperm.xlu0 %4280, %v50_v19   ;;  %116 = vperm.xlu1 %4281, %v34_v20   ;;  %v7205_v20 = vmov 0.0  }
  0x27   :  { %v701_v45 = vsub.f32 %v4505_v41, %v7182_v44 }
  0x29   :  { %v702_v48 = vand.u32 4294901760, %v701_v45 }
  0x2a   :  { %161 = vperm.xlu0 %4280, %v49_v21   ;;  %113 = vperm.xlu1 %4281, %v33_v22  }
  0x2b   :  { %703 = vmatprep.mubr.f32.mxu0 %v702_v48 }
  0x2e   :  { %158 = vperm.xlu0 %4280, %v48_v24   ;;  %110 = vperm.xlu1 %4281, %v32_v25   ;;  %v7213_v24 = vmov 1.0  }
  0x32   :  { %155 = vperm.xlu0 %4280, %v47_v31   ;;  %107 = vperm.xlu1 %4281, %v31_v32  }
  0x36   :  { %152 = vperm.xlu0 %4280, %v46_v37   ;;  %104 = vperm.xlu1 %4281, %v30_v38  }
  0x3a   :  { %149 = vperm.xlu0 %4280, %v45_v42   ;;  %101 = vperm.xlu1 %4281, %v29_v43  }
  0x3e   :  { %146 = vperm.xlu0 %4280, %v44_v46   ;;  %98 = vperm.xlu1 %4281, %v28_v47  }
  0x42   :  { %287 = vperm.xlu0 %4280, %v91_v49   ;;  %239 = vperm.xlu1 %4281, %v75_v50  }
  0x46   :  { %284 = vperm.xlu0 %4280, %v90_v51   ;;  %236 = vperm.xlu1 %4281, %v74_v52  }
  0x4a   :  { %281 = vperm.xlu0 %4280, %v89_v53   ;;  %233 = vperm.xlu1 %4281, %v73_v54  }
  0x4e   :  { %278 = vperm.xlu0 %4280, %v88_v55   ;;  %230 = vperm.xlu1 %4281, %v72_v56  }
  0x52   :  { %275 = vperm.xlu0 %4280, %v87_v57   ;;  %227 = vperm.xlu1 %4281, %v71_v58  }
  0x56   :  { %272 = vperm.xlu0 %4280, %v86_v59   ;;  %224 = vperm.xlu1 %4281, %v70_v60  }
  0x5a   :  { %269 = vperm.xlu0 %4280, %v85_v61   ;;  %221 = vperm.xlu1 %4281, %v69_v62  }
  0x5e   :  { %266 = vperm.xlu0 %4280, %v84_v63   ;;  %218 = vperm.xlu1 %4281, %v68_v0  }
  0x62   :  { %263 = vperm.xlu0 %4280, %v83_v1   ;;  %215 = vperm.xlu1 %4281, %v67_v2  }
  0x66   :  { %260 = vperm.xlu0 %4280, %v82_v3   ;;  %212 = vperm.xlu1 %4281, %v66_v4  }
  0x6a   :  { %257 = vperm.xlu0 %4280, %v81_v5   ;;  %209 = vperm.xlu1 %4281, %v65_v6  }
  0x6e   :  { %254 = vperm.xlu0 %4280, %v80_v7   ;;  %206 = vperm.xlu1 %4281, %v64_v8  }
  0x72   :  { %251 = vperm.xlu0 %4280, %v79_v9   ;;  %203 = vperm.xlu1 %4281, %v63_v10  }
  0x76   :  { %248 = vperm.xlu0 %4280, %v78_v11   ;;  %200 = vperm.xlu1 %4281, %v62_v12  }
  0x7a   :  { %245 = vperm.xlu0 %4280, %v77_v13   ;;  %197 = vperm.xlu1 %4281, %v61_v14  }
  0x7d   :  { %v4623_v18 = vpop.permute.xlu0 %191  ;;  %v4625_v19 = vpop.permute.xlu1 %188 }
  0x7e   :  { %vm320_vm2 = vcmp.eq.s32.totalorder %v4623_v18, %v4615_v15  ;;  %vm319_vm3 = vcmp.eq.s32.totalorder %v4625_v19, %v4615_v15  ;;  %242 = vperm.xlu0 %4280, %v76_v16   ;;  %194 = vperm.xlu1 %4281, %v60_v17  }
  0x7f   :  { %v3564_v21 = vsel %vm320_vm2, 1.0, %v7205_v20  ;;  %v3563_v22 = vsel %vm319_vm3, 1.0, %v7205_v20  ;;  %3853 = vmatprep.subr.msk.mxu0 %vm320_vm2, %v7213_v24 }
  0x80   :  { %v4643_v25 = vsub.f32 %v3564_v21, %v3564_v21  ;;  %v4645_v26 = vsub.f32 %v3563_v22, %v3563_v22 }
  0x81   :  { %v4647_v27 = vpop.permute.xlu0 %143  ;;  %v4649_v31 = vpop.permute.xlu1 %140 }
  0x82   :  { %vm304_vm4 = vcmp.eq.s32.totalorder %v4647_v27, %v4615_v15  ;;  %vm303_vm5 = vcmp.eq.s32.totalorder %v4649_v31, %v4615_v15  ;;  %v7198_v32 = vand.u32 4294901760, %v4643_v25  ;;  %v7196_v36 = vand.u32 4294901760, %v4645_v26 }
  0x83   :  { %v3548_v34 = vsel %vm304_vm4, 1.0, %v7205_v20  ;;  %v3547_v35 = vsel %vm303_vm5, 1.0, %v7205_v20  ;;  %3854 = vmatpush3.msk.msra.mxu0 %vm304_vm4, %v7213_v24 }
  0x84   :  { %v4669_v37 = vsub.f32 %v3548_v34, %v3548_v34  ;;  %v4671_v38 = vsub.f32 %v3547_v35, %v3547_v35  ;;  %3855 = vmatprep.subr.msk.mxu0 %vm319_vm3, %v7213_v24  ;;  %v830_v39 = vsub.f32 %v4643_v25, %v7198_v32  ;;  %v837_v49 = vsub.f32 %v4645_v26, %v7196_v36 }
  0x85   :  { %v4680_v42 = vpop.permute.xlu0 %185  ;;  %3856 = vmatpush3.msk.msra.mxu0 %vm303_vm5, %v7213_v24  ;;  %v4686_v43 = vpop.permute.xlu1 %137 }
  0x86   :  { %vm318_vm6 = vcmp.eq.s32.totalorder %v4680_v42, %v4615_v15  ;;  %vm302_vm7 = vcmp.eq.s32.totalorder %v4686_v43, %v4615_v15  ;;  %v831_v45 = vand.u32 4294901760, %v830_v39  ;;  %v7197_v46 = vand.u32 4294901760, %v4669_v37 }
  0x87   :  { %v3562_v47 = vsel %vm318_vm6, 1.0, %v7205_v20  ;;  %v3546_v48 = vsel %vm302_vm7, 1.0, %v7205_v20  ;;  %3857 = vmatprep.subr.msk.mxu0 %vm318_vm6, %v7213_v24  ;;  %v7195_v50 = vand.u32 4294901760, %v4671_v38  ;;  %v838_v61 = vand.u32 4294901760, %v837_v49 }
  0x88   :  { %v4709_v51 = vsub.f32 %v3562_v47, %v3562_v47  ;;  %v4711_v52 = vsub.f32 %v3546_v48, %v3546_v48  ;;  %3858 = vmatpush3.msk.msra.mxu0 %vm302_vm7, %v7213_v24  ;;  %3888 = vmatprep.subr.mxu1 %v831_v45  ;;  %v718_v53 = vsub.f32 %v4669_v37, %v7197_v46 }
  0x89   :  { %v4720_v54 = vpop.permute.xlu0 %182  ;;  %v4722_v55 = vpop.permute.xlu1 %134  ;;  %v725_v56 = vsub.f32 %v4671_v38, %v7195_v50 }
  0x8a   :  { %vm317_vm8 = vcmp.eq.s32.totalorder %v4720_v54, %v4615_v15  ;;  %vm301_vm9 = vcmp.eq.s32.totalorder %v4722_v55, %v4615_v15  ;;  %v719_v57 = vand.u32 4294901760, %v718_v53  ;;  %v7190_v58 = vand.u32 4294901760, %v4709_v51 }
  0x8b   :  { %v3561_v59 = vsel %vm317_vm8, 1.0, %v7205_v20  ;;  %v3545_v60 = vsel %vm301_vm9, 1.0, %v7205_v20  ;;  %3859 = vmatprep.subr.msk.mxu0 %vm317_vm8, %v7213_v24  ;;  %v7189_v62 = vand.u32 4294901760, %v4711_v52  ;;  %v726_v1 = vand.u32 4294901760, %v725_v56 }
  0x8c   :  { %v4745_v63 = vsub.f32 %v3561_v59, %v3561_v59  ;;  %v4747_v0 = vsub.f32 %v3545_v60, %v3545_v60  ;;  %3860 = vmatpush3.msk.msra.mxu0 %vm301_vm9, %v7213_v24  ;;  %3889 = vmatpush3.msra.mxu1 %v719_v57  ;;  %v844_v2 = vsub.f32 %v4709_v51, %v7190_v58 }
  0x8d   :  { %3890 = vmatprep.subr.mxu1 %v838_v61  ;;  %v4756_v3 = vpop.permute.xlu0 %179  ;;  %v4758_v4 = vpop.permute.xlu1 %131  ;;  %v732_v5 = vsub.f32 %v4711_v52, %v7189_v62 }
  0x8e   :  { %vm316_vm10 = vcmp.eq.s32.totalorder %v4756_v3, %v4615_v15  ;;  %vm7264_vm11 = vcmp.eq.s32.totalorder %v4758_v4, %v4615_v15  ;;  %3891 = vmatpush3.msra.mxu1 %v726_v1  ;;  %v845_v6 = vand.u32 4294901760, %v844_v2  ;;  %v7188_v7 = vand.u32 4294901760, %v4745_v63 }
  0x8f   :  { %v3560_v8 = vsel %vm316_vm10, 1.0, %v7205_v20  ;;  %v3544_v9 = vsel %vm7264_vm11, 1.0, %v7205_v20  ;;  %3861 = vmatprep.subr.msk.mxu0 %vm316_vm10, %v7213_v24  ;;  %v733_v10 = vand.u32 4294901760, %v732_v5  ;;  %v7183_v11 = vand.u32 4294901760, %v4747_v0 }
  0x90   :  { %v4781_v12 = vsub.f32 %v3560_v8, %v3560_v8  ;;  %v4783_v13 = vsub.f32 %v3544_v9, %v3544_v9  ;;  %3862 = vmatpush3.msk.msra.mxu0 %vm7264_vm11, %v7213_v24  ;;  %3892 = vmatprep.subr.mxu1 %v845_v6  ;;  %v851_v14 = vsub.f32 %v4745_v63, %v7188_v7 }
  0x91   :  { %v4792_v16 = vpop.permute.xlu0 %176  ;;  %3893 = vmatpush3.msra.mxu1 %v733_v10  ;;  %v4794_v17 = vpop.permute.xlu1 %128  ;;  %v739_v21 = vsub.f32 %v4747_v0, %v7183_v11 }
  0x92   :  { %vm7265_vm12 = vcmp.eq.s32.totalorder %v4792_v16, %v4615_v15  ;;  %vm7266_vm13 = vcmp.eq.s32.totalorder %v4794_v17, %v4615_v15  ;;  %v852_v22 = vand.u32 4294901760, %v851_v14  ;;  %v7181_v34 = vand.u32 4294901760, %v4781_v12 }
  0x93   :  { %v3559_v35 = vsel %vm7265_vm12, 1.0, %v7205_v20  ;;  %v3543_v39 = vsel %vm7266_vm13, 1.0, %v7205_v20  ;;  %3863 = vmatprep.subr.msk.mxu0 %vm7265_vm12, %v7213_v24  ;;  %v740_v45 = vand.u32 4294901760, %v739_v21  ;;  %v7180_v47 = vand.u32 4294901760, %v4783_v13 }
  0x94   :  { %v4817_v48 = vsub.f32 %v3559_v35, %v3559_v35  ;;  %v4819_v49 = vsub.f32 %v3543_v39, %v3543_v39  ;;  %3864 = vmatpush3.msk.msra.mxu0 %vm7266_vm13, %v7213_v24  ;;  %3894 = vmatprep.subr.mxu1 %v852_v22  ;;  %v858_v53 = vsub.f32 %v4781_v12, %v7181_v34  ;;  %v4872_v35 = vsub.s32 0, %v4472_v28 }
  0x95   :  { %v4828_v56 = vpop.permute.xlu0 %173  ;;  %3895 = vmatpush3.msra.mxu1 %v740_v45  ;;  %v4830_v57 = vpop.permute.xlu1 %125  ;;  %v746_v59 = vsub.f32 %v4783_v13, %v7180_v47 }
  0x96   :  { %vm7172_vm14 = vcmp.eq.s32.totalorder %v4828_v56, %v4615_v15  ;;  %vm7171_vm15 = vcmp.eq.s32.totalorder %v4830_v57, %v4615_v15  ;;  %v859_v60 = vand.u32 4294901760, %v858_v53  ;;  %v7179_v61 = vand.u32 4294901760, %v4817_v48  ;;  %7368 = vst [vmem:[#allocation15_spill] sm:$0xff] %v4872_v35 }
  0x97   :  { %v3558_v1 = vsel %vm7172_vm14, 1.0, %v7205_v20  ;;  %v3542_v2 = vsel %vm7171_vm15, 1.0, %v7205_v20  ;;  %3865 = vmatprep.subr.msk.mxu0 %vm7172_vm14, %v7213_v24  ;;  %v747_v5 = vand.u32 4294901760, %v746_v59  ;;  %v7174_v6 = vand.u32 4294901760, %v4819_v49 }
  0x98   :  { %v4853_v8 = vsub.f32 %v3558_v1, %v3558_v1  ;;  %v4855_v9 = vsub.f32 %v3542_v2, %v3542_v2  ;;  %3866 = vmatpush3.msk.msra.mxu0 %vm7171_vm15, %v7213_v24  ;;  %3896 = vmatprep.subr.mxu1 %v859_v60  ;;  %v865_v10 = vsub.f32 %v4817_v48, %v7179_v61 }
  0x99   :  { %v4864_v14 = vpop.permute.xlu0 %170  ;;  %3897 = vmatpush3.msra.mxu1 %v747_v5  ;;  %v4866_v21 = vpop.permute.xlu1 %122  ;;  %v753_v22 = vsub.f32 %v4819_v49, %v7174_v6  ;;  %v575_v6 = vrot.slane %v4488_v33, %v4872_v35 }
  0x9a   :  { %7367 = vst [vmem:[#allocation14_spill] sm:$0xff] %v4866_v21  ;;  %vm7176_vm15 = vcmp.eq.s32.totalorder %v4864_v14, %v4615_v15  ;;  %vm7175_vm14 = vcmp.eq.s32.totalorder %v4866_v21, %v4615_v15  ;;  %v866_v39 = vand.u32 4294901760, %v865_v10  ;;  %v7178_v45 = vand.u32 4294901760, %v4853_v8 }
  0x9b   :  { %v3557_v53 = vsel %vm7176_vm15, 1.0, %v7205_v20  ;;  %v3541_v59 = vsel %vm7175_vm14, 1.0, %v7205_v20  ;;  %3867 = vmatprep.subr.msk.mxu0 %vm7176_vm15, %v7213_v24  ;;  %v754_v60 = vand.u32 4294901760, %v753_v22  ;;  %v7177_v1 = vand.u32 4294901760, %v4855_v9 }
  0x9c   :  { %v4892_v2 = vsub.f32 %v3557_v53, %v3557_v53  ;;  %v4894_v5 = vsub.f32 %v3541_v59, %v3541_v59  ;;  %3868 = vmatpush3.msk.msra.mxu0 %vm7175_vm14, %v7213_v24  ;;  %3898 = vmatprep.subr.mxu1 %v866_v39  ;;  %v872_v10 = vsub.f32 %v4853_v8, %v7178_v45  ;;  %v7475_v27 = vand.u32 4294901760, %v4855_v9 }
  0x9d   :  { %v4903_v23 = vpop.permute.xlu0 %167  ;;  %3899 = vmatpush3.msra.mxu1 %v754_v60  ;;  %v4905_v22 = vpop.permute.xlu1 %119  ;;  %v760_v53 = vsub.f32 %v4855_v9, %v7177_v1  ;;  %v554_v59 = vrot.slane %v4474_v29, %v4872_v35 }
  0x9e   :  { %7369 = vst [vmem:[#allocation16_spill] sm:$0xff] %v4903_v23  ;;  %7370 = vst [vmem:[#allocation17_spill] sm:$0xff] %v4905_v22  ;;  %vm7184_vm14 = vcmp.eq.s32.totalorder %v4903_v23, %v4615_v15  ;;  %vm7185_vm15 = vcmp.eq.s32.totalorder %v4905_v22, %v4615_v15  ;;  %v873_v39 = vand.u32 4294901760, %v872_v10  ;;  %v7186_v60 = vand.u32 4294901760, %v4892_v2 }
  0x9f   :  { %v3556_v1 = vsel %vm7184_vm14, 1.0, %v7205_v20  ;;  %v3540_v45 = vsel %vm7185_vm15, 1.0, %v7205_v20  ;;  %3869 = vmatprep.subr.msk.mxu0 %vm7184_vm14, %v7213_v24  ;;  %v761_v61 = vand.u32 4294901760, %v760_v53  ;;  %v7187_v10 = vand.u32 4294901760, %v4894_v5 }
  0xa0   :  { %v4932_v47 = vsub.f32 %v3556_v1, %v3556_v1  ;;  %v4934_v34 = vsub.f32 %v3540_v45, %v3540_v45  ;;  %3870 = vmatpush3.msk.msra.mxu0 %vm7185_vm15, %v7213_v24  ;;  %3900 = vmatprep.subr.mxu1 %v873_v39  ;;  %v879_v44 = vsub.f32 %v4892_v2, %v7186_v60  ;;  %v7477_v19 = vand.u32 4294901760, %v4892_v2 }
  0xa1   :  { %v4943_v11 = vpop.permute.xlu0 %164  ;;  %3901 = vmatpush3.msra.mxu1 %v761_v61  ;;  %v4945_v53 = vpop.permute.xlu1 %116  ;;  %v767_v45 = vsub.f32 %v4894_v5, %v7187_v10  ;;  %v593_v1 = vsel %vm7191_vm0, %v554_v59, %v575_v6  ;;  %v7478_v31 = vand.u32 4294901760, %v4894_v5 }
  0xa2   :  { %7371 = vst [vmem:[#allocation18_spill] sm:$0xff] %v4943_v11  ;;  %7372 = vst [vmem:[#allocation19_spill] sm:$0xff] %v4945_v53  ;;  %vm311_vm14 = vcmp.eq.s32.totalorder %v4943_v11, %v4615_v15  ;;  %vm7192_vm15 = vcmp.eq.s32.totalorder %v4945_v53, %v4615_v15  ;;  %v880_v39 = vand.u32 4294901760, %v879_v44  ;;  %v7193_v60 = vand.u32 4294901760, %v4932_v47 }
  0xa3   :  { %v3555_v61 = vsel %vm311_vm14, 1.0, %v7205_v20  ;;  %v3539_v10 = vsel %vm7192_vm15, 1.0, %v7205_v20  ;;  %3871 = vmatprep.subr.msk.mxu0 %vm311_vm14, %v7213_v24  ;;  %v768_v6 = vand.u32 4294901760, %v767_v45  ;;  %v7194_v44 = vand.u32 4294901760, %v4934_v34 }
  0xa4   :  { %v4969_v59 = vsub.f32 %v3555_v61, %v3555_v61  ;;  %v4971_v7 = vsub.f32 %v3539_v10, %v3539_v10  ;;  %3872 = vmatpush3.msk.msra.mxu0 %vm7192_vm15, %v7213_v24  ;;  %3902 = vmatprep.subr.mxu1 %v880_v39  ;;  %v886_v62 = vsub.f32 %v4932_v47, %v7193_v60  ;;  %v598_v61 = vsel %vm7199_vm1, %v593_v1, 1.0 }
  0xa5   :  { %v4980_v58 = vpop.permute.xlu0 %161  ;;  %3903 = vmatpush3.msra.mxu1 %v768_v6  ;;  %v4982_v45 = vpop.permute.xlu1 %113  ;;  %v774_v10 = vsub.f32 %v4934_v34, %v7194_v44  ;;  %v7482_v43 = vand.u32 4294901760, %v4934_v34 }
  0xa6   :  { %7373 = vst [vmem:[#allocation20_spill] sm:$0xff] %v4980_v58  ;;  %7374 = vst [vmem:[#allocation21_spill] sm:$0xff] %v4982_v45  ;;  %vm310_vm0 = vcmp.eq.s32.totalorder %v4980_v58, %v4615_v15  ;;  %vm7200_vm15 = vcmp.eq.s32.totalorder %v4982_v45, %v4615_v15  ;;  %v887_v39 = vand.u32 4294901760, %v886_v62  ;;  %v7201_v60 = vand.u32 4294901760, %v4969_v59 }
  0xa7   :  { %v3554_v6 = vsel %vm310_vm0, 1.0, %v7205_v20  ;;  %v3538_v44 = vsel %vm7200_vm15, 1.0, %v7205_v20  ;;  %3873 = vmatprep.subr.msk.mxu0 %vm310_vm0, %v7213_v24  ;;  %v775_v1 = vand.u32 4294901760, %v774_v10  ;;  %v7202_v62 = vand.u32 4294901760, %v4971_v7 }
  0xa8   :  { %v5006_v50 = vsub.f32 %v3554_v6, %v3554_v6  ;;  %v5008_v36 = vsub.f32 %v3538_v44, %v3538_v44  ;;  %3874 = vmatpush3.msk.msra.mxu0 %vm7200_vm15, %v7213_v24  ;;  %3904 = vmatprep.subr.mxu1 %v887_v39  ;;  %v893_v46 = vsub.f32 %v4969_v59, %v7201_v60  ;;  %v5024_v6 = vand.u32 4294901760, %v598_v61 }
  0xa9   :  { %v5017_v32 = vpop.permute.xlu0 %158  ;;  %3905 = vmatpush3.msra.mxu1 %v775_v1  ;;  %v5019_v10 = vpop.permute.xlu1 %110  ;;  %v781_v44 = vsub.f32 %v4971_v7, %v7202_v62  ;;  %v7484_v54 = vand.u32 4294901760, %v4969_v59 }
  0xaa   :  { %7375 = vst [vmem:[#allocation22_spill] sm:$0xff] %v5017_v32  ;;  %7376 = vst [vmem:[#allocation23_spill] sm:$0xff] %v5019_v10  ;;  %vm7212_vm1 = vcmp.eq.s32.totalorder %v5017_v32, %v4615_v15  ;;  %vm7211_vm15 = vcmp.eq.s32.totalorder %v5019_v10, %v4615_v15  ;;  %v894_v39 = vand.u32 4294901760, %v893_v46  ;;  %v7215_v46 = vand.u32 4294901760, %v5008_v36 }
  0xab   :  { %7377 = vst [vmem:[#allocation24_spill] sm:$0xff] %v5024_v6  ;;  %v3553_v1 = vsel %vm7212_vm1, 1.0, %v7205_v20  ;;  %v3537_v62 = vsel %vm7211_vm15, 1.0, %v7205_v20  ;;  %3875 = vmatprep.subr.msk.mxu0 %vm7212_vm1, %v7213_v24  ;;  %v782_v35 = vand.u32 4294901760, %v781_v44  ;;  %v7378_v20 = vand.u32 4294901760, %v5006_v50 }
  0xac   :  { %v5044_v30 = vsub.f32 %v3553_v1, %v3553_v1  ;;  %v5046_v60 = vsub.f32 %v3537_v62, %v3537_v62  ;;  %3876 = vmatpush3.msk.msra.mxu0 %vm7211_vm15, %v7213_v24  ;;  %3906 = vmatprep.subr.mxu1 %v894_v39  ;;  %v788_v62 = vsub.f32 %v5008_v36, %v7215_v46  ;;  %v7382_v24 = vmov 0.0  }
  0xad   :  { %v900_v40 = vsub.f32 %v5006_v50, %v7378_v20  ;;  %v5055_v33 = vpop.permute.xlu0 %155  ;;  %3907 = vmatpush3.msra.mxu1 %v782_v35  ;;  %v5057_v44 = vpop.permute.xlu1 %107  ;;  %v5063_v1 = vsub.f32 %v598_v61, %v5024_v6  ;;  %v7383_v46 = vmov 1.0  }
  0xae   :  { %7379 = vst [vmem:[#allocation25_spill] sm:$0xff] %v5055_v33  ;;  %7380 = vst [vmem:[#allocation26_spill] sm:$0xff] %v5057_v44  ;;  %vm7226_vm15 = vcmp.eq.s32.totalorder %v5055_v33, %v4615_v15  ;;  %vm7227_vm1 = vcmp.eq.s32.totalorder %v5057_v44, %v4615_v15  ;;  %v789_v29 = vand.u32 4294901760, %v788_v62  ;;  %v7384_v32 = vand.u32 4294901760, %v5044_v30 }
  0xaf   :  { %7381 = vst [vmem:[#allocation27_spill] sm:$0xff] %v5063_v1  ;;  %v901_v39 = vand.u32 4294901760, %v900_v40  ;;  %v3552_v35 = vsel %vm7226_vm15, 1.0, %v7382_v24  ;;  %v3536_v61 = vsel %vm7227_vm1, 1.0, %v7382_v24  ;;  %3877 = vmatprep.subr.msk.mxu0 %vm7226_vm15, %v7383_v46  ;;  %v7228_v40 = vand.u32 4294901760, %v5046_v60 }
  0xb0   :  { %v5083_v10 = vsub.f32 %v3552_v35, %v3552_v35  ;;  %v5085_v20 = vsub.f32 %v3536_v61, %v3536_v61  ;;  %3878 = vmatpush3.msk.msra.mxu0 %vm7227_vm1, %v7383_v46  ;;  %v907_v28 = vsub.f32 %v5044_v30, %v7384_v32 }
  0xb1   :  { %3908 = vmatprep.subr.mxu1 %v901_v39  ;;  %v5094_v45 = vpop.permute.xlu0 %152  ;;  %v5096_v62 = vpop.permute.xlu1 %104  ;;  %v795_v35 = vsub.f32 %v5046_v60, %v7228_v40 }
  0xb2   :  { %7385 = vst [vmem:[#allocation28_spill] sm:$0xff] %v5094_v45  ;;  %3909 = vmatpush3.msra.mxu1 %v789_v29  ;;  %7386 = vst [vmem:[#allocation29_spill] sm:$0xff] %v5096_v62  ;;  %vm7240_vm15 = vcmp.eq.s32.totalorder %v5094_v45, %v4615_v15  ;;  %vm7239_vm1 = vcmp.eq.s32.totalorder %v5096_v62, %v4615_v15  ;;  %v908_v39 = vand.u32 4294901760, %v907_v28  ;;  %v7241_v28 = vand.u32 4294901760, %v5085_v20 }
  0xb3   :  { %v3551_v29 = vsel %vm7240_vm15, 1.0, %v7382_v24  ;;  %v3535_v40 = vsel %vm7239_vm1, 1.0, %v7382_v24  ;;  %3879 = vmatprep.subr.msk.mxu0 %vm7240_vm15, %v7383_v46  ;;  %v796_v61 = vand.u32 4294901760, %v795_v35  ;;  %v7389_v33 = vand.u32 4294901760, %v5083_v10 }
  0xb4   :  { %v5120_v44 = vsub.f32 %v3551_v29, %v3551_v29  ;;  %v5122_v32 = vsub.f32 %v3535_v40, %v3535_v40  ;;  %3880 = vmatpush3.msk.msra.mxu0 %vm7239_vm1, %v7383_v46  ;;  %3910 = vmatprep.subr.mxu1 %v908_v39  ;;  %v802_v40 = vsub.f32 %v5085_v20, %v7241_v28  ;;  %v7392_v29 = vand.u32 4294901760, %v5063_v1 }
  0xb5   :  { %v914_v58 = vsub.f32 %v5083_v10, %v7389_v33  ;;  %v5131_v53 = vpop.permute.xlu0 %149  ;;  %3911 = vmatpush3.msra.mxu1 %v796_v61  ;;  %v5133_v35 = vpop.permute.xlu1 %101 }
  0xb6   :  { %7387 = vst [vmem:[#allocation30_spill] sm:$0xff] %v5120_v44  ;;  %7388 = vst [vmem:[#allocation31_spill] sm:$0xff] %v5122_v32  ;;  %v707_v45 = vsub.f32 %v5063_v1, %v7392_v29  ;;  %vm7250_vm1 = vcmp.eq.s32.totalorder %v5131_v53, %v4615_v15  ;;  %vm7251_vm15 = vcmp.eq.s32.totalorder %v5133_v35, %v4615_v15  ;;  %v803_v29 = vand.u32 4294901760, %v802_v40 }
  0xb7   :  { %7390 = vst [vmem:[#allocation32_spill] sm:$0xff] %v5131_v53  ;;  %7391 = vst [vmem:[#allocation33_spill] sm:$0xff] %v5133_v35  ;;  %v915_v33 = vand.u32 4294901760, %v914_v58  ;;  %v3550_v61 = vsel %vm7250_vm1, 1.0, %v7382_v24  ;;  %v3534_v28 = vsel %vm7251_vm15, 1.0, %v7382_v24  ;;  %3881 = vmatprep.subr.msk.mxu0 %vm7250_vm1, %v7383_v46  ;;  %v7254_v58 = vand.u32 4294901760, %v5122_v32 }
  0xb8   :  { %v5159_v62 = vsub.f32 %v3550_v61, %v3550_v61  ;;  %v5161_v39 = vsub.f32 %v3534_v28, %v3534_v28  ;;  %3882 = vmatpush3.msk.msra.mxu0 %vm7251_vm15, %v7383_v46  ;;  %v7395_v1 = vand.u32 4294901760, %v5120_v44  ;;  %v708_v61 = vand.u32 4294901760, %v707_v45 }
  0xb9   :  { %3912 = vmatprep.subr.mxu1 %v915_v33  ;;  %v5170_v22 = vpop.permute.xlu0 %146  ;;  %v5172_v40 = vpop.permute.xlu1 %98  ;;  %v809_v28 = vsub.f32 %v5122_v32, %v7254_v58 }
  0xba   :  { %7393 = vst [vmem:[#allocation34_spill] sm:$0xff] %v5159_v62  ;;  %7394 = vst [vmem:[#allocation35_spill] sm:$0xff] %v5161_v39  ;;  %v921_v11 = vsub.f32 %v5120_v44, %v7395_v1  ;;  %3913 = vmatpush3.msra.mxu1 %v803_v29  ;;  %vm7286_vm1 = vcmp.eq.s32.totalorder %v5170_v22, %v4615_v15  ;;  %vm289_vm15 = vcmp.eq.s32.totalorder %v5172_v40, %v4615_v15 }
  0xbb   :  { %7396 = vst [vmem:[#allocation36_spill] sm:$0xff] %v5172_v40  ;;  %v3549_v1 = vsel %vm7286_vm1, 1.0, %v7382_v24  ;;  %v3533_v29 = vsel %vm289_vm15, 1.0, %v7382_v24  ;;  %3883 = vmatprep.subr.msk.mxu0 %vm7286_vm1, %v7383_v46  ;;  %v810_v45 = vand.u32 4294901760, %v809_v28  ;;  %v7399_v24 = vand.u32 4294901760, %v5159_v62 }
  0xbc   :  { %v922_v33 = vand.u32 4294901760, %v921_v11  ;;  %v7262_v11 = vand.u32 4294901760, %v5161_v39  ;;  %v5195_v58 = vsub.f32 %v3549_v1, %v3549_v1  ;;  %v5197_v35 = vsub.f32 %v3533_v29, %v3533_v29  ;;  %3884 = vmatpush3.msk.msra.mxu0 %vm289_vm15, %v7383_v46 }
  0xbd   :  { %v928_v53 = vsub.f32 %v5159_v62, %v7399_v24  ;;  %v5206_v32 = vpop.permute.xlu0 %287  ;;  %3923 = vmatprep.subr.mxu0 %v4643_v25  ;;  %v5209_v28 = vpop.permute.xlu1 %239  ;;  %709 = vmatmul.mubr.f32.vlgmr.msra.gmra.mxu0 %v708_v61 }
  0xbe   :  { %7397 = vst [vmem:[#allocation37_spill] sm:$0xff] %v5195_v58  ;;  %7398 = vst [vmem:[#allocation38_spill] sm:$0xff] %v5197_v35  ;;  %3914 = vmatprep.subr.mxu1 %v922_v33  ;;  %v816_v1 = vsub.f32 %v5161_v39, %v7262_v11  ;;  %v7263_v40 = vand.u32 4294901760, %v5195_v58  ;;  %3924 = vmatpush3.msra.mxu0 %v4669_v37  ;;  %v7267_v24 = vand.u32 4294901760, %v5197_v35 }
  0xbf   :  { %7400 = vst [vmem:[#allocation39_spill] sm:$0xff] %v5206_v32  ;;  %3915 = vmatpush3.msra.mxu1 %v810_v45  ;;  %7401 = vst [vmem:[#allocation40_spill] sm:$0xff] %v5209_v28  ;;  %v929_v29 = vand.u32 4294901760, %v928_v53  ;;  %1076 = vmatprep.mubr.f32.mxu0 %v4505_v41 }
  0xc0   :  { %v817_v33 = vand.u32 4294901760, %v816_v1  ;;  %3925 = vmatprep.subr.mxu0 %v4645_v26  ;;  %v935_v45 = vsub.f32 %v5195_v58, %v7263_v40  ;;  %v823_v1 = vsub.f32 %v5197_v35, %v7267_v24 }
  0xc1   :  { %3916 = vmatprep.subr.mxu1 %v929_v29  ;;  %3926 = vmatpush3.msra.mxu0 %v4671_v38  ;;  %v5223_v61 = vpop.permute.xlu0 %284  ;;  %v5225_v53 = vpop.permute.xlu1 %236 }
  0xc2   :  { %7402 = vst [vmem:[#allocation41_spill] sm:$0xff] %v5223_v61  ;;  %3917 = vmatpush3.msra.mxu1 %v817_v33  ;;  %7403 = vst [vmem:[#allocation42_spill] sm:$0xff] %v5225_v53  ;;  %3927 = vmatprep.subr.mxu0 %v4709_v51  ;;  %v936_v11 = vand.u32 4294901760, %v935_v45  ;;  %v824_v29 = vand.u32 4294901760, %v823_v1 }
  0xc3   :  { %3928 = vmatpush3.msra.mxu0 %v4711_v52 }
  0xc4   :  { %3929 = vmatprep.subr.mxu0 %v4745_v63  ;;  %3918 = vmatprep.subr.mxu1 %v936_v11 }
  0xc5   :  { %3930 = vmatpush3.msra.mxu0 %v4747_v0  ;;  %v5234_v40 = vpop.permute.xlu0 %281  ;;  %3919 = vmatpush3.msra.mxu1 %v824_v29  ;;  %v5236_v33 = vpop.permute.xlu1 %233 }
  0xc6   :  { %7404 = vst [vmem:[#allocation43_spill] sm:$0xff] %v5234_v40  ;;  %7405 = vst [vmem:[#allocation44_spill] sm:$0xff] %v5236_v33  ;;  %3931 = vmatprep.subr.mxu0 %v4781_v12  ;;  %941 = vmatmul.mubr.f32.vlgmr.msra.gmra.mxu1 %v5024_v6 }
  0xc7   :  { %3932 = vmatpush3.msra.mxu0 %v4783_v13  ;;  %3958 = vmatprep.subr.msk.mxu1 %vm320_vm2, %v7383_v46 }
  0xc8   :  { %3933 = vmatprep.subr.mxu0 %v4817_v48  ;;  %3959 = vmatpush3.msk.msra.mxu1 %vm304_vm4, %v7383_v46 }
  0xc9   :  { %3934 = vmatpush3.msra.mxu0 %v4819_v49  ;;  %3960 = vmatprep.subr.msk.mxu1 %vm319_vm3, %v7383_v46  ;;  %v5255_v11 = vpop.permute.xlu0 %278  ;;  %v5262_v45 = vpop.permute.xlu1 %230 }
  0xca   :  { %3935 = vmatprep.subr.mxu0 %v4853_v8  ;;  %3961 = vmatpush3.msk.msra.mxu1 %vm303_vm5, %v7383_v46  ;;  %7406 = vst [vmem:[#allocation45_spill] sm:$0xff] %v5262_v45 }
  0xcb   :  { %3936 = vmatpush3.msra.mxu0 %v4855_v9  ;;  %3962 = vmatprep.subr.msk.mxu1 %vm318_vm6, %v7383_v46 }
  0xcc   :  { %3937 = vmatprep.subr.mxu0 %v4892_v2  ;;  %3963 = vmatpush3.msk.msra.mxu1 %vm302_vm7, %v7383_v46  ;;  %v7481_v2 = vand.u32 4294901760, %v4932_v47 }
  0xcd   :  { %3938 = vmatpush3.msra.mxu0 %v4894_v5  ;;  %3964 = vmatprep.subr.msk.mxu1 %vm317_vm8, %v7383_v46  ;;  %v5289_v1 = vpop.permute.xlu0 %275  ;;  %v5296_v29 = vpop.permute.xlu1 %227 }
  0xce   :  { %3939 = vmatprep.subr.mxu0 %v4932_v47  ;;  %3965 = vmatpush3.msk.msra.mxu1 %vm301_vm9, %v7383_v46  ;;  %7407 = vst [vmem:[#allocation46_spill] sm:$0xff] %v5289_v1  ;;  %7408 = vst [vmem:[#allocation47_spill] sm:$0xff] %v5296_v29  ;;  %v7418_v29 = vld [vmem:[#allocation31_spill] sm:$0xff] }
  0xcf   :  { %3940 = vmatpush3.msra.mxu0 %v4934_v34  ;;  %3966 = vmatprep.subr.msk.mxu1 %vm316_vm10, %v7383_v46  ;;  %v7486_v34 = vand.u32 4294901760, %v4971_v7 }
  0xd0   :  { %3941 = vmatprep.subr.mxu0 %v4969_v59  ;;  %3967 = vmatpush3.msk.msra.mxu1 %vm7264_vm11, %v7383_v46  ;;  %vm7409_vm11 = vcmp.eq.s32.totalorder %v4828_v56, %v4615_v15  ;;  %v7488_v59 = vand.u32 4294901760, %v5006_v50 }
  0xd1   :  { %3942 = vmatpush3.msra.mxu0 %v4971_v7  ;;  %3968 = vmatprep.subr.msk.mxu1 %vm7265_vm12, %v7383_v46  ;;  %vm7410_vm12 = vcmp.eq.s32.totalorder %v4830_v57, %v4615_v15  ;;  %v5323_v24 = vpop.permute.xlu0 %272  ;;  %v5330_v6 = vpop.permute.xlu1 %224  ;;  %v7491_v7 = vand.u32 4294901760, %v5008_v36 }
  0xd2   :  { %3943 = vmatprep.subr.mxu0 %v5006_v50  ;;  %3969 = vmatpush3.msk.msra.mxu1 %vm7266_vm13, %v7383_v46  ;;  %vm7411_vm13 = vcmp.eq.s32.totalorder %v4864_v14, %v4615_v15  ;;  %7412 = vst [vmem:[#allocation48_spill] sm:$0xff] %v5323_v24  ;;  %7414 = vst [vmem:[#allocation49_spill] sm:$0xff] %v5330_v6  ;;  %v7416_v24 = vld [vmem:[#allocation17_spill] sm:$0xff]  ;;  %v7420_v6 = vld [vmem:[#allocation19_spill] sm:$0xff] }
  0xd3   :  { %3944 = vmatpush3.msra.mxu0 %v5008_v36  ;;  %3970 = vmatprep.subr.msk.mxu1 %vm7409_vm11, %v7383_v46  ;;  %vm7413_vm11 = vcmp.eq.s32.totalorder %v4866_v21, %v4615_v15  ;;  %v7424_v21 = vld [vmem:[#allocation21_spill] sm:$0xff]  ;;  %v7494_v36 = vand.u32 4294901760, %v5044_v30 }
  0xd4   :  { %3945 = vmatprep.subr.mxu0 %v5044_v30  ;;  %3971 = vmatpush3.msk.msra.mxu1 %vm7410_vm12, %v7383_v46  ;;  %vm7415_vm12 = vcmp.eq.s32.totalorder %v4903_v23, %v4615_v15  ;;  %v7442_v23 = vld [vmem:[#allocation12_spill] sm:$0xff] }
  0xd5   :  { %3946 = vmatpush3.msra.mxu0 %v5046_v60  ;;  %3972 = vmatprep.subr.msk.mxu1 %vm7411_vm13, %v7383_v46  ;;  %vm7417_vm13 = vcmp.eq.s32.totalorder %v7416_v24, %v4615_v15 }
  0xd6   :  { %3947 = vmatprep.subr.mxu0 %v5083_v10  ;;  %3973 = vmatpush3.msk.msra.mxu1 %vm7413_vm11, %v7383_v46  ;;  %vm7421_vm11 = vcmp.eq.s32.totalorder %v7420_v6, %v4615_v15  ;;  %v5367_v6 = vpop.permute.xlu1 %221 }
  0xd7   :  { %3948 = vmatpush3.msra.mxu0 %v5085_v20  ;;  %3974 = vmatprep.subr.msk.mxu1 %vm7415_vm12, %v7383_v46  ;;  %vm7425_vm12 = vcmp.eq.s32.totalorder %v7424_v21, %v4615_v15  ;;  %7428 = vst [vmem:[#allocation52_spill] sm:$0xff] %v5367_v6  ;;  %v7439_v6 = vld [vmem:[#allocation26_spill] sm:$0xff] }
  0xd8   :  { %3949 = vmatprep.subr.mxu0 %v5120_v44  ;;  %3975 = vmatpush3.msk.msra.mxu1 %vm7417_vm13, %v7383_v46  ;;  %v7431_v44 = vld [vmem:[#allocation27_spill] sm:$0xff] }
  0xd9   :  { %3950 = vmatpush3.msra.mxu0 %v7418_v29  ;;  %3976 = vmatprep.subr.msk.mxu1 %vm311_vm14, %v7383_v46  ;;  %v5357_v29 = vpop.permute.xlu0 %269 }
  0xda   :  { %3951 = vmatprep.subr.mxu0 %v5159_v62  ;;  %3977 = vmatpush3.msk.msra.mxu1 %vm7421_vm11, %v7383_v46  ;;  %7423 = vst [vmem:[#allocation50_spill] sm:$0xff] %v5357_v29  ;;  %v7426_v62 = vld [vmem:[#allocation9_spill] sm:$0xff]  ;;  %v7435_v29 = vand.u32 4294901760, %v4643_v25 }
  0xdb   :  { %3952 = vmatpush3.msra.mxu0 %v5161_v39  ;;  %3978 = vmatprep.subr.msk.mxu1 %vm310_vm0, %v7383_v46  ;;  %v5365_v24 = vsub.s32 3, %v7426_v62  ;;  %v7429_v39 = vld [vmem:[#allocation22_spill] sm:$0xff]  ;;  %v5380_v21 = vsub.s32 2, %v7426_v62 }
  0xdc   :  { %3953 = vmatprep.subr.mxu0 %v5195_v58  ;;  %3979 = vmatpush3.msk.msra.mxu1 %vm7425_vm12, %v7383_v46  ;;  %vm7430_vm13 = vcmp.eq.s32.totalorder %v7429_v39, %v4615_v15  ;;  %v7432_v58 = vld [vmem:[#allocation23_spill] sm:$0xff]  ;;  %v7438_v39 = vand.u32 4294901760, %v4669_v37 }
  0xdd   :  { %7427 = vst [vmem:[#allocation51_spill] sm:$0xff] %v5365_v24  ;;  %3954 = vmatpush3.msra.mxu0 %v5197_v35  ;;  %3980 = vmatprep.subr.msk.mxu1 %vm7430_vm13, %v7383_v46  ;;  %vm7433_vm11 = vcmp.eq.s32.totalorder %v7432_v58, %v4615_v15  ;;  %7434 = vst [vmem:[#allocation27_spill] sm:$0xff] %v5380_v21  ;;  %v7436_v35 = vld [vmem:[#allocation25_spill] sm:$0xff]  ;;  %vm7440_vm13 = vcmp.eq.s32.totalorder %v7439_v6, %v4615_v15  ;;  %v7441_v58 = vld [vmem:[#allocation10_spill] sm:$0xff]  ;;  %v5404_v37 = vpop.permute.xlu0 %266 }
  0xde   :  { %1079 = vmatmul.mubr.f32.vlgmr.msra.gmra.mxu0 %v7431_v44  ;;  %3981 = vmatpush3.msk.msra.mxu1 %vm7433_vm11, %v7383_v46  ;;  %vm7437_vm12 = vcmp.eq.s32.totalorder %v7436_v35, %v4615_v15  ;;  %v566_v62 = vrot.slane %v7441_v58, %v5365_v24  ;;  %v587_v25 = vrot.slane %v7442_v23, %v5365_v24  ;;  %v7444_v35 = vld [vmem:[#allocation28_spill] sm:$0xff]  ;;  %v7448_v6 = vld [vmem:[#allocation29_spill] sm:$0xff] }
  0xdf   :  { %3993 = vmatprep.subr.mxu0 %v7435_v29  ;;  %3982 = vmatprep.subr.msk.mxu1 %vm7437_vm12, %v7383_v46  ;;  %v7443_v29 = vand.u32 4294901760, %v4645_v26  ;;  %vm7445_vm11 = vcmp.eq.s32.totalorder %v7444_v35, %v4615_v15  ;;  %7446 = vst [vmem:[#allocation12_spill] sm:$0xff] %v5404_v37  ;;  %vm7449_vm12 = vcmp.eq.s32.totalorder %v7448_v6, %v4615_v15  ;;  %v7451_v35 = vand.u32 4294901760, %v4709_v51  ;;  %v7452_v37 = vld [vmem:[#allocation32_spill] sm:$0xff] }
  0xe0   :  { %3994 = vmatpush3.msra.mxu0 %v7438_v39  ;;  %3983 = vmatpush3.msk.msra.mxu1 %vm7440_vm13, %v7383_v46  ;;  %v7447_v39 = vand.u32 4294901760, %v4671_v38  ;;  %v562_v24 = vrot.slane %v7441_v58, %v5380_v21  ;;  %v583_v26 = vrot.slane %v7442_v23, %v5380_v21  ;;  %vm7453_vm13 = vcmp.eq.s32.totalorder %v7452_v37, %v4615_v15 }
  0xe1   :  { %3995 = vmatprep.subr.mxu0 %v7443_v29  ;;  %3984 = vmatprep.subr.msk.mxu1 %vm7445_vm11, %v7383_v46  ;;  %v5416_v29 = vpop.permute.xlu1 %218  ;;  %v7454_v38 = vand.u32 4294901760, %v4711_v52  ;;  %v7458_v58 = vand.u32 4294901760, %v4745_v63  ;;  %v7459_v51 = vand.u32 4294901760, %v4747_v0  ;;  %v7462_v63 = vand.u32 4294901760, %v4505_v41  ;;  %v5453_v0 = vpop.permute.xlu0 %263 }
  0xe2   :  { %3996 = vmatpush3.msra.mxu0 %v7447_v39  ;;  %3985 = vmatpush3.msk.msra.mxu1 %vm7449_vm12, %v7383_v46  ;;  %7450 = vst [vmem:[#allocation29_spill] sm:$0xff] %v5416_v29  ;;  %v7455_v39 = vld [vmem:[#allocation33_spill] sm:$0xff]  ;;  %vm7457_vm12 = vcmask 1040384   ;;  %7465 = vst [vmem:[#allocation32_spill] sm:$0xff] %v5453_v0  ;;  %v7469_v41 = vand.u32 4294901760, %v4817_v48 }
  0xe3   :  { %3997 = vmatprep.subr.mxu0 %v7451_v35  ;;  %3986 = vmatprep.subr.msk.mxu1 %vm7453_vm13, %v7383_v46  ;;  %vm7456_vm11 = vcmp.eq.s32.totalorder %v7455_v39, %v4615_v15  ;;  %v596_v23 = vsel %vm7457_vm12, %v566_v62, %v587_v25  ;;  %vm7461_vm13 = vmmov %vm7457_vm12  ;;  %v7463_v62 = vand.u32 4294901760, %v4781_v12  ;;  %vm7464_vm12 = vcmask 1041408  }
  0xe4   :  { %3998 = vmatpush3.msra.mxu0 %v7454_v38  ;;  %3987 = vmatpush3.msk.msra.mxu1 %vm7456_vm11, %v7383_v46  ;;  %v595_v35 = vsel %vm7461_vm13, %v562_v24, %v583_v26  ;;  %vm7305_vm11 = vcmp.eq.s32.totalorder %v5209_v28, %v4615_v15  ;;  %v7466_v25 = vand.u32 4294901760, %v7431_v44  ;;  %v7467_v24 = vand.u32 4294901760, %v4783_v13  ;;  %vm7470_vm13 = vmmov %vm7464_vm12 }
  0xe5   :  { %3999 = vmatprep.subr.mxu0 %v7458_v58  ;;  %3988 = vmatprep.subr.msk.mxu1 %vm7286_vm1, %v7383_v46  ;;  %v601_v58 = vsel %vm7464_vm12, %v596_v23, 1.0  ;;  %vm7304_vm1 = vcmp.eq.s32.totalorder %v5206_v32, %v4615_v15  ;;  %v5459_v26 = vpop.permute.xlu1 %215  ;;  %v600_v12 = vsel %vm7470_vm13, %v595_v35, 1.0  ;;  %v7471_v38 = vmov 0.0   ;;  %v5508_v35 = vpop.permute.xlu0 %260  ;;  %v7543_v32 = vld [vmem:[#allocation26_spill] sm:$0xff] }
  0xe6   :  { %4000 = vmatpush3.msra.mxu0 %v7459_v51  ;;  %3989 = vmatpush3.msk.msra.mxu1 %vm289_vm15, %v7383_v46  ;;  %7468 = vst [vmem:[#allocation33_spill] sm:$0xff] %v5459_v26  ;;  %v3580_v44 = vsel %vm7305_vm11, 1.0, %v7471_v38  ;;  %v7472_v13 = vand.u32 4294901760, %v4819_v49  ;;  %v5478_v18 = vand.u32 4294901760, %v601_v58  ;;  %v3596_v48 = vsel %vm7304_vm1, 1.0, %v7471_v38 }
  0xe7   :  { %1183 = vmatprep.mubr.f32.mxu1 %v7462_v63  ;;  %4001 = vmatprep.subr.mxu0 %v7463_v62  ;;  %v7474_v23 = vand.u32 4294901760, %v4853_v8  ;;  %v5496_v49 = vand.u32 4294901760, %v600_v12  ;;  %v5498_v51 = vsub.f32 %v3580_v44, %v3580_v44  ;;  %v5506_v8 = vsub.f32 %v3596_v48, %v3596_v48  ;;  %v7499_v44 = vld [vmem:[#allocation47_spill] sm:$0xff]  ;;  %v7503_v48 = vld [vmem:[#allocation49_spill] sm:$0xff] }
  0xe8   :  { %1187 = vmatmul.mubr.f32.vlgmr.msra.gmra.mxu1 %v7466_v25  ;;  %4002 = vmatpush3.msra.mxu0 %v7467_v24  ;;  %7473 = vst [vmem:[#allocation36_spill] sm:$0xff] %v5478_v18  ;;  %v5517_v9 = vsub.f32 %v601_v58, %v5478_v18  ;;  %v7496_v24 = vand.u32 4294901760, %v5046_v60  ;;  %vm7324_vm12 = vcmp.eq.s32.totalorder %v5255_v11, %v4615_v15 }
  0xe9   :  { %4028 = vmatprep.subr.msk.mxu1 %vm320_vm2, %v7383_v46  ;;  %4003 = vmatprep.subr.mxu0 %v7469_v41  ;;  %7476 = vst [vmem:[#allocation53_spill] sm:$0xff] %v5496_v49  ;;  %vm335_vm2 = vcmp.eq.s32.totalorder %v5225_v53, %v4615_v15  ;;  %v5521_v42 = vpop.permute.xlu1 %212  ;;  %v5536_v5 = vsub.f32 %v600_v12, %v5496_v49  ;;  %v7291_v63 = vand.u32 4294901760, %v5498_v51  ;;  %v7292_v3 = vand.u32 4294901760, %v5506_v8  ;;  %v5571_v62 = vpop.permute.xlu0 %257 }
  0xea   :  { %4029 = vmatpush3.msk.msra.mxu1 %vm304_vm4, %v7383_v46  ;;  %4004 = vmatpush3.msra.mxu0 %v7472_v13  ;;  %7479 = vst [vmem:[#allocation54_spill] sm:$0xff] %v5517_v9  ;;  %7480 = vst [vmem:[#allocation55_spill] sm:$0xff] %v5521_v42  ;;  %v3579_v55 = vsel %vm335_vm2, 1.0, %v7471_v38  ;;  %vm7356_vm4 = vcmp.eq.s32.totalorder %v5236_v33, %v4615_v15  ;;  %v7290_v47 = vand.u32 4294901760, %v5517_v9  ;;  %v7500_v13 = vld [vmem:[#allocation14_spill] sm:$0xff] }
  0xeb   :  { %4030 = vmatprep.subr.msk.mxu1 %vm319_vm3, %v7383_v46  ;;  %4005 = vmatprep.subr.mxu0 %v7474_v23  ;;  %7483 = vst [vmem:[#allocation56_spill] sm:$0xff] %v5536_v5  ;;  %vm351_vm3 = vcmp.eq.s32.totalorder %v5223_v61, %v4615_v15  ;;  %7489 = vst [vmem:[#allocation57_spill] sm:$0xff] %v5571_v62  ;;  %v5580_v58 = vsub.f32 %v3579_v55, %v3579_v55  ;;  %v3578_v50 = vsel %vm7356_vm4, 1.0, %v7471_v38  ;;  %v7504_v23 = vld [vmem:[#allocation16_spill] sm:$0xff] }
  0xec   :  { %4031 = vmatpush3.msk.msra.mxu1 %vm303_vm5, %v7383_v46  ;;  %4006 = vmatpush3.msra.mxu0 %v7475_v27  ;;  %vm7485_vm5 = vcmp.eq.s32.totalorder %v4758_v4, %v4615_v15  ;;  %v3595_v4 = vsel %vm351_vm3, 1.0, %v7471_v38  ;;  %v5615_v30 = vsub.f32 %v5517_v9, %v7290_v47  ;;  %vm7318_vm13 = vcmp.eq.s32.totalorder %v5262_v45, %v4615_v15  ;;  %v7506_v27 = vld [vmem:[#allocation30_spill] sm:$0xff] }
  0xed   :  { %4032 = vmatprep.subr.msk.mxu1 %vm318_vm6, %v7383_v46  ;;  %4007 = vmatprep.subr.mxu0 %v7477_v19  ;;  %vm7487_vm6 = vcmp.eq.s32.totalorder %v4792_v16, %v4615_v15  ;;  %v7289_v16 = vand.u32 4294901760, %v5536_v5  ;;  %v5588_v25 = vpop.permute.xlu1 %209  ;;  %v5617_v41 = vsub.f32 %v3595_v4, %v3595_v4  ;;  %v5633_v12 = vsub.f32 %v3578_v50, %v3578_v50  ;;  %v5670_v55 = vpop.permute.xlu0 %254 }
  0xee   :  { %4033 = vmatpush3.msk.msra.mxu1 %vm302_vm7, %v7383_v46  ;;  %4008 = vmatpush3.msra.mxu0 %v7478_v31  ;;  %vm7490_vm7 = vcmp.eq.s32.totalorder %v4794_v17, %v4615_v15  ;;  %7492 = vst [vmem:[#allocation58_spill] sm:$0xff] %v5588_v25  ;;  %v5599_v17 = vsub.f32 %v5498_v51, %v7291_v63  ;;  %v7507_v19 = vand.u32 4294901760, %v7506_v27  ;;  %7509 = vst [vmem:[#allocation14_spill] sm:$0xff] %v5670_v55  ;;  %v7528_v31 = vld [vmem:[#allocation21_spill] sm:$0xff] }
  0xef   :  { %4034 = vmatprep.subr.msk.mxu1 %vm317_vm8, %v7383_v46  ;;  %4009 = vmatprep.subr.mxu0 %v7481_v2  ;;  %vm350_vm8 = vcmp.eq.s32.totalorder %v5234_v40, %v4615_v15  ;;  %v3593_v2 = vsel %vm7324_vm12, 1.0, %v7471_v38 }
  0xf0   :  { %4035 = vmatpush3.msk.msra.mxu1 %vm301_vm9, %v7383_v46  ;;  %4010 = vmatpush3.msra.mxu0 %v7482_v43  ;;  %vm7493_vm9 = vcmp.eq.s32.totalorder %v4828_v56, %v4615_v15  ;;  %v5610_v56 = vsub.f32 %v5506_v8, %v7292_v3  ;;  %v3594_v60 = vsel %vm350_vm8, 1.0, %v7471_v38  ;;  %v3577_v43 = vsel %vm7318_vm13, 1.0, %v7471_v38  ;;  %v7527_v3 = vld [vmem:[#allocation12_spill] sm:$0xff] }
  0xf1   :  { %4036 = vmatprep.subr.msk.mxu1 %vm316_vm10, %v7383_v46  ;;  %4011 = vmatprep.subr.mxu0 %v7484_v54  ;;  %vm7495_vm10 = vcmp.eq.s32.totalorder %v4830_v57, %v4615_v15  ;;  %v7498_v57 = vand.u32 4294901760, %v5083_v10  ;;  %v7294_v10 = vand.u32 4294901760, %v5580_v58  ;;  %v7508_v54 = vld [vmem:[#allocation48_spill] sm:$0xff]  ;;  %v5679_v50 = vsub.f32 %v3594_v60, %v3594_v60  ;;  %v7517_v60 = vld [vmem:[#allocation34_spill] sm:$0xff]  ;;  %v5768_v27 = vpop.permute.xlu0 %251 }
  0xf2   :  { %4037 = vmatpush3.msk.msra.mxu1 %vm7485_vm5, %v7383_v46  ;;  %4012 = vmatpush3.msra.mxu0 %v7486_v34  ;;  %vm7497_vm5 = vcmp.eq.s32.totalorder %v4864_v14, %v4615_v15  ;;  %v7502_v14 = vand.u32 4294901760, %v5085_v20  ;;  %v5658_v20 = vsub.f32 %v5536_v5, %v7289_v16  ;;  %v7510_v34 = vld [vmem:[#allocation17_spill] sm:$0xff]  ;;  %v5715_v16 = vsub.f32 %v3577_v43, %v3577_v43 }
  0xf3   :  { %4038 = vmatprep.subr.msk.mxu1 %vm7487_vm6, %v7383_v46  ;;  %4013 = vmatprep.subr.mxu0 %v7488_v59  ;;  %vm7288_vm6 = vcmp.eq.s32.totalorder %v5289_v1, %v4615_v15  ;;  %v7512_v59 = vld [vmem:[#allocation31_spill] sm:$0xff]  ;;  %7535 = vst [vmem:[#allocation16_spill] sm:$0xff] %v5768_v27 }
  0xf4   :  { %4039 = vmatpush3.msk.msra.mxu1 %vm7490_vm7, %v7383_v46  ;;  %4014 = vmatpush3.msra.mxu0 %v7491_v7  ;;  %vm7287_vm7 = vcmp.eq.s32.totalorder %v7499_v44, %v4615_v15  ;;  %v7513_v4 = vand.u32 4294901760, %v7512_v59  ;;  %v7520_v59 = vld [vmem:[#allocation19_spill] sm:$0xff]  ;;  %v7533_v7 = vld [vmem:[#allocation22_spill] sm:$0xff] }
  0xf5   :  { %4040 = vmatprep.subr.msk.mxu1 %vm7493_vm9, %v7383_v46  ;;  %4015 = vmatprep.subr.mxu0 %v7494_v36  ;;  %vm7501_vm9 = vcmp.eq.s32.totalorder %v7500_v13, %v4615_v15  ;;  %v3592_v36 = vsel %vm7288_vm6, 1.0, %v7471_v38  ;;  %v5691_v13 = vpop.permute.xlu1 %206  ;;  %vm7521_vm6 = vcmp.eq.s32.totalorder %v7520_v59, %v4615_v15  ;;  %v7530_v59 = vld [vmem:[#allocation38_spill] sm:$0xff]  ;;  %v5875_v40 = vpop.permute.xlu0 %248 }
  0xf6   :  { %4041 = vmatpush3.msk.msra.mxu1 %vm7495_vm10, %v7383_v46  ;;  %4016 = vmatpush3.msra.mxu0 %v7496_v24  ;;  %vm7293_vm10 = vcmp.eq.s32.totalorder %v7503_v48, %v4615_v15  ;;  %v3576_v24 = vsel %vm7287_vm7, 1.0, %v7471_v38  ;;  %7515 = vst [vmem:[#allocation49_spill] sm:$0xff] %v5691_v13 }
  0xf7   :  { %4042 = vmatprep.subr.msk.mxu1 %vm7497_vm5, %v7383_v46  ;;  %4017 = vmatprep.subr.mxu0 %v7498_v57  ;;  %vm7505_vm5 = vcmp.eq.s32.totalorder %v7504_v23, %v4615_v15  ;;  %v7514_v57 = vld [vmem:[#allocation52_spill] sm:$0xff]  ;;  %v7518_v23 = vand.u32 4294901760, %v7517_v60  ;;  %v5731_v43 = vsub.f32 %v3576_v24, %v3576_v24 }
  0xf8   :  { %4043 = vmatpush3.msk.msra.mxu1 %vm7501_vm9, %v7383_v46  ;;  %4018 = vmatpush3.msra.mxu0 %v7502_v14  ;;  %vm7321_vm9 = vcmp.eq.s32.totalorder %v7508_v54, %v4615_v15  ;;  %v7536_v60 = vld [vmem:[#allocation24_spill] sm:$0xff] }
  0xf9   :  { %4044 = vmatprep.subr.msk.mxu1 %vm7505_vm5, %v7383_v46  ;;  %4019 = vmatprep.subr.mxu0 %v7507_v19  ;;  %vm7511_vm5 = vcmp.eq.s32.totalorder %v7510_v34, %v4615_v15  ;;  %v3575_v19 = vsel %vm7293_vm10, 1.0, %v7471_v38  ;;  %v7519_v34 = vld [vmem:[#allocation50_spill] sm:$0xff]  ;;  %v3591_v47 = vsel %vm7321_vm9, 1.0, %v7471_v38  ;;  %vm7529_vm10 = vcmp.eq.s32.totalorder %v7528_v31, %v4615_v15  ;;  %v5792_v49 = vpop.permute.xlu1 %203 }
  0xfa   :  { %4045 = vmatpush3.msk.msra.mxu1 %vm7511_vm5, %v7383_v46  ;;  %4020 = vmatpush3.msra.mxu0 %v7513_v4  ;;  %vm7328_vm5 = vcmp.eq.s32.totalorder %v7514_v57, %v4615_v15  ;;  %vm7327_vm7 = vcmp.eq.s32.totalorder %v7519_v34, %v4615_v15  ;;  %v7522_v4 = vld [vmem:[#allocation35_spill] sm:$0xff]  ;;  %v5759_v31 = vsub.f32 %v5580_v58, %v7294_v10  ;;  %v7539_v10 = vand.u32 4294901760, %v5617_v41 }
  0xfb   :  { %4046 = vmatprep.subr.msk.mxu1 %vm311_vm14, %v7383_v46  ;;  %4021 = vmatprep.subr.mxu0 %v7518_v23  ;;  %v7523_v14 = vand.u32 4294901760, %v7522_v4  ;;  %v5713_v23 = vsub.f32 %v3593_v2, %v3593_v2  ;;  %vm7333_vm14 = vcmp.eq.s32.totalorder %v5416_v29, %v4615_v15  ;;  %v7525_v4 = vld [vmem:[#allocation37_spill] sm:$0xff]  ;;  %v5729_v2 = vsub.f32 %v3592_v36, %v3592_v36 }
  0xfc   :  { %4047 = vmatpush3.msk.msra.mxu1 %vm7521_vm6, %v7383_v46  ;;  %v3574_v63 = vsel %vm7328_vm5, 1.0, %v7471_v38  ;;  %vm7329_vm6 = vcmp.eq.s32.totalorder %v7527_v3, %v4615_v15  ;;  %v5745_v36 = vsub.f32 %v3575_v19, %v3575_v19  ;;  %v3590_v24 = vsel %vm7327_vm7, 1.0, %v7471_v38 }
  0xfd   :  { %4022 = vmatpush3.msra.mxu0 %v7523_v14  ;;  %4048 = vmatprep.subr.msk.mxu1 %vm310_vm0, %v7383_v46  ;;  %v7526_v14 = vand.u32 4294901760, %v7525_v4  ;;  %v7531_v4 = vand.u32 4294901760, %v7530_v59  ;;  %vm7534_vm0 = vcmp.eq.s32.totalorder %v7533_v7, %v4615_v15  ;;  %v5762_v59 = vsub.f32 %v3591_v47, %v3591_v47  ;;  %v7537_v7 = vld [vmem:[#allocation23_spill] sm:$0xff]  ;;  %v5897_v18 = vpop.permute.xlu1 %200 }
  0xfe   :  { %4049 = vmatpush3.msk.msra.mxu1 %vm7529_vm10, %v7383_v46  ;;  %vm7538_vm10 = vcmp.eq.s32.totalorder %v7537_v7, %v4615_v15  ;;  %v5778_v19 = vsub.f32 %v5617_v41, %v7539_v10  ;;  %v7540_v47 = vand.u32 4294901760, %v5633_v12  ;;  %v5786_v9 = vsub.f32 %v3574_v63, %v3574_v63  ;;  %v7541_v10 = vld [vmem:[#allocation25_spill] sm:$0xff] }
  0xff   :  { %4023 = vmatprep.subr.mxu0 %v7526_v14  ;;  %v7532_v14 = vld [vmem:[#allocation13_spill] sm:$0xff]  ;;  %4050 = vmatprep.subr.msk.mxu1 %vm7534_vm0, %v7383_v46  ;;  %v3589_v7 = vsel %vm7329_vm6, 1.0, %v7471_v38  ;;  %vm7542_vm0 = vcmp.eq.s32.totalorder %v7541_v10, %v4615_v15  ;;  %v5804_v5 = vsub.f32 %v3590_v24, %v3590_v24  ;;  %v7545_v24 = vld [vmem:[#allocation28_spill] sm:$0xff]  ;;  %v7551_v63 = vand.u32 4294901760, %v5715_v16 }
 0x100   :  { %4024 = vmatpush3.msra.mxu0 %v7531_v4  ;;  %1353 = vmatprep.mubr.f32.mxu0 %v7532_v14  ;;  %v3573_v4 = vsel %vm7333_vm14, 1.0, %v7471_v38  ;;  %v5783_v21 = vsub.f32 %v5633_v12, %v7540_v47 }
 0x101   :  { %1355 = vmatmul.mubr.f32.vlgmr.msra.gmra.mxu0 %v7536_v60  ;;  %4051 = vmatpush3.msk.msra.mxu1 %vm7538_vm10, %v7383_v46  ;;  %vm7334_vm10 = vcmp.eq.s32.totalorder %v5453_v0, %v4615_v15  ;;  %v5818_v47 = vsub.f32 %v3573_v4, %v3573_v4  ;;  %v5835_v4 = vsub.f32 %v3589_v7, %v3589_v7  ;;  %v6001_v45 = vpop.permute.xlu1 %197 }
 0x102   :  { %4063 = vmatprep.subr.msk.mxu0 %vm7304_vm1, %v7383_v46  ;;  %4052 = vmatprep.subr.msk.mxu1 %vm7542_vm0, %v7383_v46  ;;  %vm7544_vm1 = vcmp.eq.s32.totalorder %v7543_v32, %v4615_v15  ;;  %vm7337_vm0 = vcmp.eq.s32.totalorder %v5459_v26, %v4615_v15  ;;  %v7547_v32 = vand.u32 4294901760, %v5679_v50  ;;  %v3588_v7 = vsel %vm7334_vm10, 1.0, %v7471_v38 }
 0x103   :  { %4064 = vmatpush3.msk.msra.mxu0 %vm7305_vm11, %v7383_v46  ;;  %4053 = vmatpush3.msk.msra.mxu1 %vm7544_vm1, %v7383_v46  ;;  %vm7546_vm11 = vcmp.eq.s32.totalorder %v7545_v24, %v4615_v15  ;;  %vm7548_vm1 = vcmp.eq.s32.totalorder %v7448_v6, %v4615_v15  ;;  %v1700_v24 = vand.u32 4294901760, %v5778_v19  ;;  %v7550_v6 = vand.u32 4294901760, %v5713_v23 }
 0x104   :  { %4065 = vmatprep.subr.msk.mxu0 %vm351_vm3, %v7383_v46  ;;  %4054 = vmatprep.subr.msk.mxu1 %vm7546_vm11, %v7383_v46  ;;  %v5833_v10 = vsub.f32 %v5679_v50, %v7547_v32  ;;  %vm7549_vm11 = vcmp.eq.s32.totalorder %v7452_v37, %v4615_v15  ;;  %v5869_v32 = vsub.f32 %v5715_v16, %v7551_v63  ;;  %v3572_v61 = vsel %vm7337_vm0, 1.0, %v7471_v38 }
 0x105   :  { %4066 = vmatpush3.msk.msra.mxu0 %vm335_vm2, %v7383_v46  ;;  %4055 = vmatpush3.msk.msra.mxu1 %vm7548_vm1, %v7383_v46  ;;  %v5864_v19 = vsub.f32 %v5713_v23, %v7550_v6  ;;  %vm7552_vm1 = vcmp.eq.s32.totalorder %v7455_v39, %v4615_v15  ;;  %v7553_v37 = vand.u32 4294901760, %v5729_v2  ;;  %v7554_v6 = vand.u32 4294901760, %v5731_v43 }
 0x106   :  { %4067 = vmatprep.subr.msk.mxu0 %vm350_vm8, %v7383_v46  ;;  %4056 = vmatprep.subr.msk.mxu1 %vm7549_vm11, %v7383_v46  ;;  %vm7555_vm11 = vcmp.eq.s32.totalorder %v5170_v22, %v4615_v15  ;;  %v1707_v39 = vand.u32 4294901760, %v5833_v10  ;;  %v5914_v28 = vsub.f32 %v3588_v7, %v3588_v7  ;;  %v5932_v7 = vsub.f32 %v3572_v61, %v3572_v61 }
 0x107   :  { %4068 = vmatpush3.msk.msra.mxu0 %vm7356_vm4, %v7383_v46  ;;  %4057 = vmatpush3.msk.msra.mxu1 %vm7552_vm1, %v7383_v46  ;;  %v5888_v63 = vsub.f32 %v5729_v2, %v7553_v37  ;;  %v5893_v53 = vsub.f32 %v5731_v43, %v7554_v6  ;;  %v1595_v37 = vand.u32 4294901760, %v5783_v21  ;;  %v7556_v6 = vand.u32 4294901760, %v5745_v36 }
 0x108   :  { %4069 = vmatprep.subr.msk.mxu0 %vm7324_vm12, %v7383_v46  ;;  %4058 = vmatprep.subr.msk.mxu1 %vm7555_vm11, %v7383_v46  ;;  %vm7341_vm1 = vcmp.eq.s32.totalorder %v5521_v42, %v4615_v15  ;;  %v7557_v21 = vand.u32 4294901760, %v5762_v59  ;;  %vm7340_vm11 = vcmp.eq.s32.totalorder %v5508_v35, %v4615_v15  ;;  %v1602_v52 = vand.u32 4294901760, %v5869_v32 }
 0x109   :  { %v5912_v33 = vsub.f32 %v5745_v36, %v7556_v6  ;;  %4070 = vmatpush3.msk.msra.mxu0 %vm7318_vm13, %v7383_v46  ;;  %4059 = vmatpush3.msk.msra.mxu1 %vm289_vm15, %v7383_v46  ;;  %vm7558_vm13 = vcmp.eq.s32.totalorder %v5289_v1, %v4615_v15  ;;  %v7559_v6 = vand.u32 4294901760, %v5786_v9  ;;  %vm7560_vm15 = vcmp.eq.s32.totalorder %v7499_v44, %v4615_v15 }
 0x10a   :  { %v5929_v22 = vsub.f32 %v5762_v59, %v7557_v21  ;;  %1457 = vmatprep.mubr.f32.mxu1 %v7532_v14  ;;  %4071 = vmatprep.subr.msk.mxu0 %vm7558_vm13, %v7383_v46  ;;  %v1714_v61 = vand.u32 4294901760, %v5864_v19  ;;  %v1721_v14 = vand.u32 4294901760, %v5888_v63  ;;  %v7561_v32 = vand.u32 4294901760, %v5804_v5 }
 0x10b   :  { %v5945_v21 = vsub.f32 %v5786_v9, %v7559_v6  ;;  %1459 = vmatmul.mubr.f32.vlgmr.msra.gmra.mxu1 %v7536_v60  ;;  %4072 = vmatpush3.msk.msra.mxu0 %vm7560_vm15, %v7383_v46  ;;  %v3571_v60 = vsel %vm7341_vm1, 1.0, %v7471_v38  ;;  %vm342_vm13 = vcmp.eq.s32.totalorder %v5571_v62, %v4615_v15  ;;  %v7562_v6 = vand.u32 4294901760, %v5610_v56  ;;  %v5984_v56 = vpop.permute.xlu0 %245 }
 0x10c   :  { %v5958_v1 = vsub.f32 %v5804_v5, %v7561_v32  ;;  %4073 = vmatprep.subr.msk.mxu0 %vm7321_vm9, %v7383_v46  ;;  %v7563_v63 = vand.u32 4294901760, %v5818_v47  ;;  %v3587_v10 = vsel %vm7340_vm11, 1.0, %v7471_v38  ;;  %vm326_vm15 = vcmp.eq.s32.totalorder %v5588_v25, %v4615_v15 }
 0x10d   :  { %4098 = vmatprep.subr.mxu1 %v7562_v6  ;;  %v7564_v6 = vand.u32 4294901760, %v5599_v17  ;;  %vm7565_vm9 = vcmp.eq.s32.totalorder %v7503_v48, %v4615_v15  ;;  %v7330_v54 = vand.u32 4294901760, %v5914_v28  ;;  %vm341_vm12 = vcmp.eq.s32.totalorder %v5670_v55, %v4615_v15 }
 0x10e   :  { %v5976_v32 = vsub.f32 %v5818_v47, %v7563_v63  ;;  %4074 = vmatpush3.msk.msra.mxu0 %vm7565_vm9, %v7383_v46  ;;  %v7566_v63 = vand.u32 4294901760, %v5835_v4  ;;  %v1728_v17 = vand.u32 4294901760, %v5929_v22  ;;  %v3586_v44 = vsel %vm342_vm13, 1.0, %v7471_v38 }
 0x10f   :  { %4099 = vmatpush3.msra.mxu1 %v7564_v6  ;;  %4075 = vmatprep.subr.msk.mxu0 %vm7327_vm7, %v7383_v46  ;;  %vm325_vm9 = vcmp.eq.s32.totalorder %v5691_v13, %v4615_v15  ;;  %v1735_v22 = vand.u32 4294901760, %v5958_v1  ;;  %v3570_v6 = vsel %vm326_vm15, 1.0, %v7471_v38  ;;  %vm340_vm7 = vcmp.eq.s32.totalorder %v5768_v27, %v4615_v15 }
 0x110   :  { %v5995_v19 = vsub.f32 %v5835_v4, %v7566_v63  ;;  %4100 = vmatprep.subr.mxu1 %v1700_v24  ;;  %v6009_v63 = vsub.f32 %v3571_v60, %v3571_v60  ;;  %v7567_v24 = vand.u32 4294901760, %v5759_v31  ;;  %4076 = vmatpush3.msk.msra.mxu0 %vm7328_vm5, %v7383_v46  ;;  %v6024_v60 = vsub.f32 %v3587_v10, %v3587_v10 }
 0x111   :  { %4077 = vmatprep.subr.msk.mxu0 %vm7329_vm6, %v7383_v46  ;;  %v3585_v1 = vsel %vm341_vm12, 1.0, %v7471_v38  ;;  %vm324_vm5 = vcmp.eq.s32.totalorder %v5792_v49, %v4615_v15  ;;  %v6051_v10 = vsub.f32 %v5914_v28, %v7330_v54  ;;  %v3569_v31 = vsel %vm325_vm9, 1.0, %v7471_v38  ;;  %v7692_v49 = vld [vmem:[#allocation15_spill] sm:$0xff] }
 0x112   :  { %4101 = vmatpush3.msra.mxu1 %v7567_v24  ;;  %4078 = vmatpush3.msk.msra.mxu0 %vm7333_vm14, %v7383_v46  ;;  %v6053_v24 = vsub.f32 %v3586_v44, %v3586_v44  ;;  %vm339_vm6 = vcmp.eq.s32.totalorder %v5875_v40, %v4615_v15  ;;  %v6071_v54 = vsub.f32 %v3570_v6, %v3570_v6  ;;  %v3584_v29 = vsel %vm340_vm7, 1.0, %v7471_v38  ;;  %v6093_v44 = vpop.permute.xlu1 %194  ;;  %v6635_v40 = vld [vmem:[%s7165_s2] sm:$0xf] }
 0x113   :  { %4102 = vmatprep.subr.mxu1 %v1707_v39  ;;  %v1742_v39 = vand.u32 4294901760, %v5995_v19  ;;  %4079 = vmatprep.subr.msk.mxu0 %vm7334_vm10, %v7383_v46  ;;  %vm323_vm14 = vcmp.eq.s32.totalorder %v5897_v18, %v4615_v15  ;;  %v3568_v6 = vsel %vm324_vm5, 1.0, %v7471_v38  ;;  %vm338_vm10 = vcmp.eq.s32.totalorder %v5984_v56, %v4615_v15 }
 0x114   :  { %4103 = vmatpush3.msra.mxu1 %v1595_v37  ;;  %v7568_v37 = vand.u32 4294901760, %v5932_v7  ;;  %4080 = vmatpush3.msk.msra.mxu0 %vm7337_vm0, %v7383_v46  ;;  %v3583_v26 = vsel %vm339_vm6, 1.0, %v7471_v38  ;;  %vm322_vm0 = vcmp.eq.s32.totalorder %v6001_v45, %v4615_v15  ;;  %v7569_v0 = vand.u32 4294901760, %v5893_v53  ;;  %v7691_v45 = vld [vmem:[#allocation11_spill] sm:$0xff] }
 0x115   :  { %4104 = vmatprep.subr.mxu1 %v1714_v61  ;;  %v6079_v61 = vpop.permute.xlu0 %242  ;;  %4081 = vmatprep.subr.msk.mxu0 %vm7340_vm11, %v7383_v46  ;;  %v6143_v53 = vsub.f32 %v3583_v26, %v3583_v26  ;;  %v7572_v62 = vand.u32 4294901760, %v5945_v21  ;;  %v7576_v55 = vand.u32 4294901760, %v5976_v32  ;;  %v6639_v18 = vrot.slane %v6635_v40, %v7691_v45 }
 0x116   :  { %v6068_v19 = vsub.f32 %v5932_v7, %v7568_v37  ;;  %4105 = vmatpush3.msra.mxu1 %v1602_v52  ;;  %v6085_v37 = vsub.f32 %v3585_v1, %v3585_v1  ;;  %v6100_v1 = vsub.f32 %v3569_v31, %v3569_v31  ;;  %4082 = vmatpush3.msk.msra.mxu0 %vm7341_vm1, %v7383_v46  ;;  %v3567_v52 = vsel %vm323_vm14, 1.0, %v7471_v38 }
 0x117   :  { %4106 = vmatprep.subr.mxu1 %v1721_v14  ;;  %v1749_v14 = vand.u32 4294901760, %v6051_v10  ;;  %v6115_v31 = vsub.f32 %v3584_v29, %v3584_v29  ;;  %vm7355_vm11 = vcmp.eq.s32.totalorder %v6079_v61, %v4615_v15  ;;  %4083 = vmatprep.subr.msk.mxu0 %vm342_vm13, %v7383_v46  ;;  %v6129_v29 = vsub.f32 %v3568_v6, %v3568_v6 }
 0x118   :  { %4107 = vmatpush3.msra.mxu1 %v7569_v0  ;;  %v3582_v10 = vsel %vm338_vm10, 1.0, %v7471_v38  ;;  %vm7354_vm1 = vcmp.eq.s32.totalorder %v6093_v44, %v4615_v15  ;;  %4084 = vmatpush3.msk.msra.mxu0 %vm326_vm15, %v7383_v46  ;;  %v3566_v6 = vsel %vm322_vm0, 1.0, %v7471_v38  ;;  %v6158_v25 = vsub.f32 %v3567_v52, %v3567_v52 }
 0x119   :  { %4108 = vmatprep.subr.mxu1 %v1728_v17  ;;  %v7570_v17 = vand.u32 4294901760, %v5912_v33  ;;  %4085 = vmatprep.subr.msk.mxu0 %vm341_vm12, %v7383_v46  ;;  %v7571_v33 = vand.u32 4294901760, %v6024_v60  ;;  %v6173_v26 = vsub.f32 %v3582_v10, %v3582_v10  ;;  %v3565_v52 = vsel %vm7354_vm1, 1.0, %v7471_v38 }
 0x11a   :  { %4086 = vmatpush3.msk.msra.mxu0 %vm325_vm9, %v7383_v46  ;;  %v7579_v32 = vand.u32 4294901760, %v6085_v37  ;;  %v7353_v10 = vand.u32 4294901760, %v6143_v53  ;;  %v6211_v13 = vsub.f32 %v3565_v52, %v3565_v52  ;;  %v1564_v52 = vand.u32 4294901760, %v5615_v30 }
 0x11b   :  { %4109 = vmatpush3.msra.mxu1 %v7570_v17  ;;  %v1755_v17 = vsub.f32 %v6024_v60, %v7571_v33  ;;  %v7573_v33 = vand.u32 4294901760, %v6009_v63  ;;  %4087 = vmatprep.subr.msk.mxu0 %vm340_vm7, %v7383_v46  ;;  %v6643_v56 = vrot.slane %v6635_v40, %v7692_v49 }
 0x11c   :  { %4110 = vmatprep.subr.mxu1 %v1735_v22  ;;  %v3581_v22 = vsel %vm7355_vm11, 1.0, %v7471_v38  ;;  %4088 = vmatpush3.msk.msra.mxu0 %vm324_vm5, %v7383_v46  ;;  %v7577_v38 = vand.u32 4294901760, %v6071_v54  ;;  %7580 = vst [vmem:[#allocation31_spill] sm:$0xff] %v6211_v13 }
 0x11d   :  { %4111 = vmatpush3.msra.mxu1 %v7572_v62  ;;  %v1643_v0 = vsub.f32 %v6009_v63, %v7573_v33  ;;  %v7574_v62 = vand.u32 4294901760, %v6053_v24  ;;  %v6188_v33 = vsub.f32 %v3566_v6, %v3566_v6  ;;  %v6200_v27 = vsub.f32 %v3581_v22, %v3581_v22  ;;  %4089 = vmatprep.subr.msk.mxu0 %vm339_vm6, %v7383_v46 }
 0x11e   :  { %4112 = vmatprep.subr.mxu1 %v1742_v39  ;;  %v1637_v39 = vand.u32 4294901760, %v6068_v19  ;;  %v1769_v6 = vsub.f32 %v6085_v37, %v7579_v32  ;;  %4090 = vmatpush3.msk.msra.mxu0 %vm323_vm14, %v7383_v46  ;;  %v7357_v19 = vand.u32 4294901760, %v6173_v26 }
 0x11f   :  { %v1762_v21 = vsub.f32 %v6053_v24, %v7574_v62  ;;  %7575 = vst [vmem:[#allocation30_spill] sm:$0xff] %v6188_v33  ;;  %4113 = vmatpush3.msra.mxu1 %v7576_v55  ;;  %v1650_v62 = vsub.f32 %v6071_v54, %v7577_v38  ;;  %7578 = vst [vmem:[#allocation17_spill] sm:$0xff] %v6200_v27  ;;  %v1756_v55 = vand.u32 4294901760, %v1755_v17  ;;  %v1644_v38 = vand.u32 4294901760, %v1643_v0 }
 0x120   :  { %4114 = vmatprep.subr.mxu1 %v1749_v14  ;;  %v7581_v14 = vand.u32 4294901760, %v6100_v1  ;;  %4091 = vmatprep.subr.msk.mxu0 %vm338_vm10, %v7383_v46 }
 0x121   :  { %4115 = vmatpush3.msra.mxu1 %v1637_v39  ;;  %v1763_v22 = vand.u32 4294901760, %v1762_v21  ;;  %v7582_v39 = vand.u32 4294901760, %v6115_v31  ;;  %4092 = vmatpush3.msk.msra.mxu0 %vm322_vm0, %v7383_v46  ;;  %v7583_v21 = vand.u32 4294901760, %v6129_v29 }
 0x122   :  { %v1657_v17 = vsub.f32 %v6100_v1, %v7581_v14  ;;  %4116 = vmatprep.subr.mxu1 %v1756_v55  ;;  %v1651_v55 = vand.u32 4294901760, %v1650_v62  ;;  %v1570_v14 = vand.u32 4294901760, %v5658_v20  ;;  %4093 = vmatprep.subr.msk.mxu0 %vm7355_vm11, %v7383_v46  ;;  %v7585_v62 = vand.u32 4294901760, %v6188_v33 }
 0x123   :  { %v1776_v32 = vsub.f32 %v6115_v31, %v7582_v39  ;;  %4117 = vmatpush3.msra.mxu1 %v1644_v38  ;;  %v1664_v30 = vsub.f32 %v6129_v29, %v7583_v21  ;;  %v1770_v39 = vand.u32 4294901760, %v1769_v6  ;;  %v1783_v38 = vsub.f32 %v6143_v53, %v7353_v10  ;;  %4094 = vmatpush3.msk.msra.mxu0 %vm7354_vm1, %v7383_v46 }
 0x124   :  { %4118 = vmatprep.subr.mxu1 %v1763_v22  ;;  %v1658_v20 = vand.u32 4294901760, %v1657_v17  ;;  %v7584_v22 = vand.u32 4294901760, %v6158_v25  ;;  %1565 = vmatprep.mubr.f32.mxu0 %v1564_v52  ;;  %v1790_v10 = vsub.f32 %v6173_v26, %v7357_v19  ;;  %v1678_v0 = vsub.f32 %v6188_v33, %v7585_v62 }
 0x125   :  { %4119 = vmatpush3.msra.mxu1 %v1651_v55  ;;  %v1777_v6 = vand.u32 4294901760, %v1776_v32  ;;  %1571 = vmatmul.mubr.f32.vlgmr.msra.gmra.mxu0 %v1570_v14  ;;  %v1665_v55 = vand.u32 4294901760, %v1664_v30  ;;  %v1784_v17 = vand.u32 4294901760, %v1783_v38  ;;  %v7587_v14 = vand.u32 4294901760, %v6211_v13 }
 0x126   :  { %v1671_v21 = vsub.f32 %v6158_v25, %v7584_v22  ;;  %4120 = vmatprep.subr.mxu1 %v1770_v39  ;;  %4133 = vmatprep.subr.mxu0 %v5506_v8  ;;  %v7586_v22 = vand.u32 4294901760, %v6200_v27  ;;  %v1791_v39 = vand.u32 4294901760, %v1790_v10  ;;  %v1679_v38 = vand.u32 4294901760, %v1678_v0  ;;  %v7589_v10 = vld [vmem:[#allocation53_spill] sm:$0xff]  ;;  %v7590_v0 = vld [vmem:[#allocation39_spill] sm:$0xff] }
 0x127   :  { %4121 = vmatpush3.msra.mxu1 %v1658_v20  ;;  %4134 = vmatpush3.msra.mxu0 %v5498_v51  ;;  %v1685_v30 = vsub.f32 %v6211_v13, %v7587_v14  ;;  %vm7591_vm1 = vcmp.eq.s32.totalorder %v7590_v0, %v4615_v15  ;;  %v7601_v14 = vld [vmem:[#allocation46_spill] sm:$0xff] }
 0x128   :  { %4122 = vmatprep.subr.mxu1 %v1777_v6  ;;  %v1797_v52 = vsub.f32 %v6200_v27, %v7586_v22  ;;  %v1672_v32 = vand.u32 4294901760, %v1671_v21  ;;  %4135 = vmatprep.subr.mxu0 %v5617_v41  ;;  %v7588_v21 = vld [vmem:[#allocation36_spill] sm:$0xff] }
 0x129   :  { %4123 = vmatpush3.msra.mxu1 %v1665_v55  ;;  %4136 = vmatpush3.msra.mxu0 %v5580_v58  ;;  %v1686_v20 = vand.u32 4294901760, %v1685_v30  ;;  %v7592_v6 = vld [vmem:[#allocation40_spill] sm:$0xff]  ;;  %v7603_v30 = vld [vmem:[#allocation47_spill] sm:$0xff] }
 0x12a   :  { %4124 = vmatprep.subr.mxu1 %v1784_v17  ;;  %4137 = vmatprep.subr.mxu0 %v5679_v50  ;;  %v1798_v62 = vand.u32 4294901760, %v1797_v52  ;;  %vm7593_vm11 = vcmp.eq.s32.totalorder %v7592_v6, %v4615_v15  ;;  %v7597_v52 = vld [vmem:[#allocation44_spill] sm:$0xff] }
 0x12b   :  { %4125 = vmatpush3.msra.mxu1 %v1672_v32  ;;  %4138 = vmatpush3.msra.mxu0 %v5633_v12  ;;  %v7599_v32 = vld [vmem:[#allocation45_spill] sm:$0xff] }
 0x12c   :  { %4126 = vmatprep.subr.mxu1 %v1791_v39  ;;  %4139 = vmatprep.subr.mxu0 %v5713_v23  ;;  %v7605_v39 = vld [vmem:[#allocation48_spill] sm:$0xff] }
 0x12d   :  { %4127 = vmatpush3.msra.mxu1 %v1679_v38  ;;  %4140 = vmatpush3.msra.mxu0 %v5715_v16  ;;  %v7611_v38 = vld [vmem:[#allocation29_spill] sm:$0xff] }
 0x12e   :  { %4128 = vmatprep.subr.mxu1 %v1798_v62  ;;  %1801 = vmatprep.mubr.f32.mxu1 %v7588_v21  ;;  %v7613_v62 = vld [vmem:[#allocation32_spill] sm:$0xff]  ;;  %v7621_v21 = vld [vmem:[#allocation54_spill] sm:$0xff] }
 0x12f   :  { %4129 = vmatpush3.msra.mxu1 %v1686_v20  ;;  %4141 = vmatprep.subr.mxu0 %v5729_v2  ;;  %v7615_v20 = vld [vmem:[#allocation33_spill] sm:$0xff] }
 0x130   :  { %1803 = vmatmul.mubr.f32.vlgmr.msra.gmra.mxu1 %v7589_v10  ;;  %4142 = vmatpush3.msra.mxu0 %v5731_v43 }
 0x131   :  { %4168 = vmatprep.subr.msk.mxu1 %vm7591_vm1, %v7383_v46  ;;  %4143 = vmatprep.subr.mxu0 %v5762_v59  ;;  %vm7598_vm1 = vcmp.eq.s32.totalorder %v5255_v11, %v4615_v15 }
 0x132   :  { %4169 = vmatpush3.msk.msra.mxu1 %vm7593_vm11, %v7383_v46  ;;  %4144 = vmatpush3.msra.mxu0 %v5745_v36  ;;  %vm7600_vm11 = vcmp.eq.s32.totalorder %v7599_v32, %v4615_v15 }
 0x133   :  { %4170 = vmatprep.subr.msk.mxu1 %vm351_vm3, %v7383_v46  ;;  %4145 = vmatprep.subr.mxu0 %v5804_v5 }
 0x134   :  { %4171 = vmatpush3.msk.msra.mxu1 %vm335_vm2, %v7383_v46  ;;  %4146 = vmatpush3.msra.mxu0 %v5786_v9 }
 0x135   :  { %4172 = vmatprep.subr.msk.mxu1 %vm350_vm8, %v7383_v46  ;;  %4147 = vmatprep.subr.mxu0 %v5835_v4 }
 0x136   :  { %4173 = vmatpush3.msk.msra.mxu1 %vm7356_vm4, %v7383_v46  ;;  %4148 = vmatpush3.msra.mxu0 %v5818_v47  ;;  %vm7602_vm4 = vcmp.eq.s32.totalorder %v7601_v14, %v4615_v15 }
 0x137   :  { %4174 = vmatprep.subr.msk.mxu1 %vm7598_vm1, %v7383_v46  ;;  %4149 = vmatprep.subr.mxu0 %v5914_v28  ;;  %vm7604_vm1 = vcmp.eq.s32.totalorder %v7603_v30, %v4615_v15 }
 0x138   :  { %4175 = vmatpush3.msk.msra.mxu1 %vm7600_vm11, %v7383_v46  ;;  %4150 = vmatpush3.msra.mxu0 %v5932_v7  ;;  %vm7606_vm11 = vcmp.eq.s32.totalorder %v7605_v39, %v4615_v15 }
 0x139   :  { %4176 = vmatprep.subr.msk.mxu1 %vm7602_vm4, %v7383_v46  ;;  %4151 = vmatprep.subr.mxu0 %v6024_v60  ;;  %vm7607_vm4 = vcmp.eq.s32.totalorder %v7503_v48, %v4615_v15 }
 0x13a   :  { %4177 = vmatpush3.msk.msra.mxu1 %vm7604_vm1, %v7383_v46  ;;  %4152 = vmatpush3.msra.mxu0 %v6009_v63  ;;  %vm7608_vm1 = vcmp.eq.s32.totalorder %v7519_v34, %v4615_v15 }
 0x13b   :  { %4178 = vmatprep.subr.msk.mxu1 %vm7606_vm11, %v7383_v46  ;;  %4153 = vmatprep.subr.mxu0 %v6053_v24  ;;  %vm7609_vm11 = vcmp.eq.s32.totalorder %v7514_v57, %v4615_v15 }
 0x13c   :  { %4179 = vmatpush3.msk.msra.mxu1 %vm7607_vm4, %v7383_v46  ;;  %4154 = vmatpush3.msra.mxu0 %v6071_v54  ;;  %vm7610_vm4 = vcmp.eq.s32.totalorder %v7527_v3, %v4615_v15 }
 0x13d   :  { %4180 = vmatprep.subr.msk.mxu1 %vm7608_vm1, %v7383_v46  ;;  %4155 = vmatprep.subr.mxu0 %v6085_v37  ;;  %vm7612_vm1 = vcmp.eq.s32.totalorder %v7611_v38, %v4615_v15 }
 0x13e   :  { %4181 = vmatpush3.msk.msra.mxu1 %vm7609_vm11, %v7383_v46  ;;  %4156 = vmatpush3.msra.mxu0 %v6100_v1  ;;  %vm7614_vm11 = vcmp.eq.s32.totalorder %v7613_v62, %v4615_v15 }
 0x13f   :  { %4182 = vmatprep.subr.msk.mxu1 %vm7610_vm4, %v7383_v46  ;;  %4157 = vmatprep.subr.mxu0 %v6115_v31  ;;  %vm7616_vm4 = vcmp.eq.s32.totalorder %v7615_v20, %v4615_v15 }
 0x140   :  { %4183 = vmatpush3.msk.msra.mxu1 %vm7612_vm1, %v7383_v46  ;;  %4158 = vmatpush3.msra.mxu0 %v6129_v29  ;;  %vm7617_vm1 = vcmp.eq.s32.totalorder %v5508_v35, %v4615_v15 }
 0x141   :  { %4184 = vmatprep.subr.msk.mxu1 %vm7614_vm11, %v7383_v46  ;;  %4159 = vmatprep.subr.mxu0 %v6143_v53  ;;  %vm7618_vm11 = vcmp.eq.s32.totalorder %v5521_v42, %v4615_v15  ;;  %v7628_v42 = vand.u32 4294901760, %v5617_v41  ;;  %v7634_v41 = vand.u32 4294901760, %v5715_v16  ;;  %v7641_v16 = vand.u32 4294901760, %v5762_v59 }
 0x142   :  { %4185 = vmatpush3.msk.msra.mxu1 %vm7616_vm4, %v7383_v46  ;;  %4160 = vmatpush3.msra.mxu0 %v6158_v25  ;;  %vm7633_vm4 = vcmp.eq.s32.totalorder %v6079_v61, %v4615_v15  ;;  %v7652_v59 = vand.u32 4294901760, %v5932_v7  ;;  %v7662_v7 = vand.u32 4294901760, %v6085_v37 }
 0x143   :  { %4186 = vmatprep.subr.msk.mxu1 %vm7617_vm1, %v7383_v46  ;;  %4161 = vmatprep.subr.mxu0 %v6173_v26  ;;  %vm7635_vm1 = vcmp.eq.s32.totalorder %v6093_v44, %v4615_v15 }
 0x144   :  { %4187 = vmatpush3.msk.msra.mxu1 %vm7618_vm11, %v7383_v46  ;;  %4162 = vmatpush3.msra.mxu0 %v6188_v33  ;;  %v7623_v33 = vld [vmem:[#allocation56_spill] sm:$0xff]  ;;  %vm7640_vm11 = vcmp.eq.s32.totalorder %v7590_v0, %v4615_v15  ;;  %v7688_v0 = vmov 0.0  }
 0x145   :  { %4188 = vmatprep.subr.msk.mxu1 %vm342_vm13, %v7383_v46  ;;  %4163 = vmatprep.subr.mxu0 %v6200_v27  ;;  %v7625_v27 = vand.u32 4294901760, %v5506_v8  ;;  %v7629_v8 = vand.u32 4294901760, %v5580_v58  ;;  %v7632_v58 = vand.u32 4294901760, %v5713_v23  ;;  %v7643_v23 = vand.u32 4294901760, %v5745_v36 }
 0x146   :  { %4189 = vmatpush3.msk.msra.mxu1 %vm326_vm15, %v7383_v46  ;;  %4164 = vmatpush3.msra.mxu0 %v6211_v13  ;;  %v7627_v13 = vand.u32 4294901760, %v5498_v51  ;;  %v7630_v51 = vand.u32 4294901760, %v5679_v50  ;;  %v7637_v50 = vand.u32 4294901760, %v5729_v2  ;;  %v7644_v2 = vand.u32 4294901760, %v5804_v5 }
 0x147   :  { %1938 = vmatprep.mubr.f32.mxu0 %v7621_v21  ;;  %4190 = vmatprep.subr.msk.mxu1 %vm341_vm12, %v7383_v46  ;;  %v7646_v36 = vand.u32 4294901760, %v5835_v4  ;;  %v7648_v5 = vand.u32 4294901760, %v5818_v47  ;;  %v7654_v47 = vand.u32 4294901760, %v6024_v60  ;;  %v7660_v4 = vand.u32 4294901760, %v6071_v54  ;;  %v7675_v60 = vld [vmem:[#allocation55_spill] sm:$0xff] }
 0x148   :  { %1941 = vmatmul.mubr.f32.vlgmr.msra.gmra.mxu0 %v7623_v33  ;;  %4191 = vmatpush3.msk.msra.mxu1 %vm325_vm9, %v7383_v46  ;;  %v7668_v54 = vand.u32 4294901760, %v6129_v29 }
 0x149   :  { %4203 = vmatprep.subr.mxu0 %v7625_v27  ;;  %4192 = vmatprep.subr.msk.mxu1 %vm340_vm7, %v7383_v46  ;;  %v7639_v27 = vand.u32 4294901760, %v5731_v43  ;;  %v7645_v43 = vand.u32 4294901760, %v5786_v9  ;;  %v7650_v9 = vand.u32 4294901760, %v5914_v28  ;;  %v7656_v28 = vand.u32 4294901760, %v6009_v63 }
 0x14a   :  { %4204 = vmatpush3.msra.mxu0 %v7627_v13  ;;  %4193 = vmatpush3.msk.msra.mxu1 %vm324_vm5, %v7383_v46  ;;  %v7638_v13 = vand.u32 4294901760, %v7623_v33  ;;  %v7664_v63 = vand.u32 4294901760, %v6100_v1 }
 0x14b   :  { %4205 = vmatprep.subr.mxu0 %v7628_v42  ;;  %4194 = vmatprep.subr.msk.mxu1 %vm339_vm6, %v7383_v46  ;;  %v7631_v42 = vand.u32 4294901760, %v5633_v12  ;;  %v7636_v12 = vand.u32 4294901760, %v7621_v21  ;;  %v7687_v21 = vld [vmem:[#allocation53_spill] sm:$0xff] }
 0x14c   :  { %4206 = vmatpush3.msra.mxu0 %v7629_v8  ;;  %4195 = vmatpush3.msk.msra.mxu1 %vm323_vm14, %v7383_v46 }
 0x14d   :  { %4207 = vmatprep.subr.mxu0 %v7630_v51  ;;  %4196 = vmatprep.subr.msk.mxu1 %vm338_vm10, %v7383_v46 }
 0x14e   :  { %4208 = vmatpush3.msra.mxu0 %v7631_v42  ;;  %4197 = vmatpush3.msk.msra.mxu1 %vm322_vm0, %v7383_v46 }
 0x14f   :  { %4209 = vmatprep.subr.mxu0 %v7632_v58  ;;  %4198 = vmatprep.subr.msk.mxu1 %vm7633_vm4, %v7383_v46  ;;  %vm7642_vm4 = vcmp.eq.s32.totalorder %v7592_v6, %v4615_v15 }
 0x150   :  { %4210 = vmatpush3.msra.mxu0 %v7634_v41  ;;  %4199 = vmatpush3.msk.msra.mxu1 %vm7635_vm1, %v7383_v46  ;;  %vm7653_vm1 = vcmp.eq.s32.totalorder %v7601_v14, %v4615_v15 }
 0x151   :  { %2045 = vmatprep.mubr.f32.mxu1 %v7636_v12  ;;  %4211 = vmatprep.subr.mxu0 %v7637_v50 }
 0x152   :  { %2049 = vmatmul.mubr.f32.vlgmr.msra.gmra.mxu1 %v7638_v13  ;;  %4212 = vmatpush3.msra.mxu0 %v7639_v27 }
 0x153   :  { %4238 = vmatprep.subr.msk.mxu1 %vm7640_vm11, %v7383_v46  ;;  %4213 = vmatprep.subr.mxu0 %v7641_v16  ;;  %vm7655_vm11 = vcmp.eq.s32.totalorder %v7603_v30, %v4615_v15 }
 0x154   :  { %4239 = vmatpush3.msk.msra.mxu1 %vm7642_vm4, %v7383_v46  ;;  %4214 = vmatpush3.msra.mxu0 %v7643_v23  ;;  %vm7657_vm4 = vcmp.eq.s32.totalorder %v7605_v39, %v4615_v15 }
 0x155   :  { %4240 = vmatprep.subr.msk.mxu1 %vm351_vm3, %v7383_v46  ;;  %4215 = vmatprep.subr.mxu0 %v7644_v2  ;;  %vm7647_vm3 = vcmp.eq.s32.totalorder %v7597_v52, %v4615_v15 }
 0x156   :  { %4241 = vmatpush3.msk.msra.mxu1 %vm335_vm2, %v7383_v46  ;;  %4216 = vmatpush3.msra.mxu0 %v7645_v43  ;;  %vm7649_vm2 = vcmp.eq.s32.totalorder %v5255_v11, %v4615_v15  ;;  %v7658_v11 = vand.u32 4294901760, %v6053_v24  ;;  %v7677_v24 = vld [vmem:[#allocation30_spill] sm:$0xff] }
 0x157   :  { %4242 = vmatprep.subr.msk.mxu1 %vm350_vm8, %v7383_v46  ;;  %4217 = vmatprep.subr.mxu0 %v7646_v36  ;;  %vm7651_vm8 = vcmp.eq.s32.totalorder %v7599_v32, %v4615_v15  ;;  %v7678_v37 = vand.u32 4294901760, %v7677_v24 }
 0x158   :  { %4243 = vmatpush3.msk.msra.mxu1 %vm7647_vm3, %v7383_v46  ;;  %4218 = vmatpush3.msra.mxu0 %v7648_v5  ;;  %vm7659_vm3 = vcmp.eq.s32.totalorder %v7503_v48, %v4615_v15  ;;  %v7666_v48 = vand.u32 4294901760, %v6115_v31 }
 0x159   :  { %4244 = vmatprep.subr.msk.mxu1 %vm7649_vm2, %v7383_v46  ;;  %4219 = vmatprep.subr.mxu0 %v7650_v9  ;;  %vm7661_vm2 = vcmp.eq.s32.totalorder %v7519_v34, %v4615_v15  ;;  %v7674_v34 = vand.u32 4294901760, %v6173_v26  ;;  %v7685_v26 = vld [vmem:[#allocation36_spill] sm:$0xff] }
 0x15a   :  { %4245 = vmatpush3.msk.msra.mxu1 %vm7651_vm8, %v7383_v46  ;;  %4220 = vmatpush3.msra.mxu0 %v7652_v59  ;;  %vm7663_vm8 = vcmp.eq.s32.totalorder %v7514_v57, %v4615_v15  ;;  %v7670_v57 = vand.u32 4294901760, %v6143_v53  ;;  %v7683_v53 = vld [vmem:[#allocation31_spill] sm:$0xff] }
 0x15b   :  { %4246 = vmatprep.subr.msk.mxu1 %vm7653_vm1, %v7383_v46  ;;  %4221 = vmatprep.subr.mxu0 %v7654_v47  ;;  %vm7665_vm1 = vcmp.eq.s32.totalorder %v7527_v3, %v4615_v15  ;;  %v7672_v3 = vand.u32 4294901760, %v6158_v25  ;;  %v7680_v25 = vld [vmem:[#allocation17_spill] sm:$0xff]  ;;  %v7684_v29 = vand.u32 4294901760, %v7683_v53 }
 0x15c   :  { %4247 = vmatpush3.msk.msra.mxu1 %vm7655_vm11, %v7383_v46  ;;  %4222 = vmatpush3.msra.mxu0 %v7656_v28  ;;  %vm7667_vm11 = vcmp.eq.s32.totalorder %v7611_v38, %v4615_v15  ;;  %v7681_v31 = vand.u32 4294901760, %v7680_v25 }
 0x15d   :  { %4248 = vmatprep.subr.msk.mxu1 %vm7657_vm4, %v7383_v46  ;;  %4223 = vmatprep.subr.mxu0 %v7658_v11  ;;  %vm7669_vm4 = vcmp.eq.s32.totalorder %v7613_v62, %v4615_v15 }
 0x15e   :  { %4249 = vmatpush3.msk.msra.mxu1 %vm7659_vm3, %v7383_v46  ;;  %4224 = vmatpush3.msra.mxu0 %v7660_v4  ;;  %vm7671_vm3 = vcmp.eq.s32.totalorder %v7615_v20, %v4615_v15 }
 0x15f   :  { %4250 = vmatprep.subr.msk.mxu1 %vm7661_vm2, %v7383_v46  ;;  %4225 = vmatprep.subr.mxu0 %v7662_v7  ;;  %vm7673_vm2 = vcmp.eq.s32.totalorder %v5508_v35, %v4615_v15 }
 0x160   :  { %4251 = vmatpush3.msk.msra.mxu1 %vm7663_vm8, %v7383_v46  ;;  %4226 = vmatpush3.msra.mxu0 %v7664_v63  ;;  %vm7676_vm8 = vcmp.eq.s32.totalorder %v7675_v60, %v4615_v15 }
 0x161   :  { %4252 = vmatprep.subr.msk.mxu1 %vm7665_vm1, %v7383_v46  ;;  %4227 = vmatprep.subr.mxu0 %v7666_v48  ;;  %vm3490_vm1 = vcmask 253952  }
 0x162   :  { %4253 = vmatpush3.msk.msra.mxu1 %vm7667_vm11, %v7383_v46  ;;  %4228 = vmatpush3.msra.mxu0 %v7668_v54  ;;  %vm2364_vm11 = vcmask 261120  }
 0x163   :  { %4254 = vmatprep.subr.msk.mxu1 %vm7669_vm4, %v7383_v46  ;;  %4229 = vmatprep.subr.mxu0 %v7670_v57 }
 0x164   :  { %4255 = vmatpush3.msk.msra.mxu1 %vm7671_vm3, %v7383_v46  ;;  %4230 = vmatpush3.msra.mxu0 %v7672_v3 }
 0x165   :  { %4256 = vmatprep.subr.msk.mxu1 %vm7673_vm2, %v7383_v46  ;;  %4231 = vmatprep.subr.mxu0 %v7674_v34 }
 0x166   :  { %4257 = vmatpush3.msk.msra.mxu1 %vm7676_vm8, %v7383_v46  ;;  %4232 = vmatpush3.msra.mxu0 %v7678_v37 }
 0x167   :  { %4258 = vmatprep.subr.msk.mxu1 %vm342_vm13, %v7383_v46  ;;  %4233 = vmatprep.subr.mxu0 %v7681_v31 }
 0x168   :  { %4259 = vmatpush3.msk.msra.mxu1 %vm326_vm15, %v7383_v46  ;;  %4234 = vmatpush3.msra.mxu0 %v7684_v29 }
 0x169   :  { %2215 = vmatprep.mubr.f32.mxu0 %v7685_v26  ;;  %4260 = vmatprep.subr.msk.mxu1 %vm341_vm12, %v7383_v46  ;;  %vm7689_vm12 = vcmp.eq.s32.totalorder %v6079_v61, %v4615_v15  ;;  %v7693_v61 = vld [vmem:[#allocation9_spill] sm:$0xff] }
 0x16a   :  { %2217 = vmatmul.mubr.f32.vlgmr.msra.gmra.mxu0 %v7687_v21  ;;  %4261 = vmatpush3.msk.msra.mxu1 %vm325_vm9, %v7383_v46  ;;  %v6672_v55 = vadd.s32 8, %v7693_v61  ;;  %vm503_vm15 = vcmp.eq.s32.totalorder %v7693_v61, %v6639_v18  ;;  %vm502_vm9 = vcmp.eq.s32.totalorder %v7693_v61, %v6643_v56 }
 0x16b   :  { %4262 = vmatprep.subr.msk.mxu1 %vm340_vm7, %v7383_v46  ;;  %2319 = vmatprep.mubr.f32.mxu1 %v7685_v26  ;;  %vm7690_vm7 = vcmp.eq.s32.totalorder %v6093_v44, %v4615_v15  ;;  %v6646_v15 = vadd.s32 24, %v7693_v61  ;;  %v6651_v44 = vadd.s32 16, %v7693_v61  ;;  %v3598_v36 = vsel %vm503_vm15, 1.0, %v7688_v0 }
 0x16c   :  { %4263 = vmatpush3.msk.msra.mxu1 %vm324_vm5, %v7383_v46  ;;  %2440 = vmatprep.mubr.f32.mxu0 %v7688_v0  ;;  %vm506_vm13 = vcmp.eq.s32.totalorder %v6672_v55, %v6643_v56  ;;  %v6759_v9 = vsub.f32 %v3598_v36, %v3598_v36  ;;  %v3597_v59 = vsel %vm502_vm9, 1.0, %v7688_v0 }
 0x16d   :  { %4264 = vmatprep.subr.msk.mxu1 %vm339_vm6, %v7383_v46  ;;  %vm515_vm5 = vcmp.eq.s32.totalorder %v6646_v15, %v6639_v18  ;;  %vm511_vm6 = vcmp.eq.s32.totalorder %v6651_v44, %v6639_v18  ;;  %v3601_v58 = vsel %vm506_vm13, 1.0, %v7688_v0  ;;  %v6772_v11 = vsub.f32 %v3597_v59, %v3597_v59 }
 0x16e   :  { %4265 = vmatpush3.msk.msra.mxu1 %vm323_vm14, %v7383_v46  ;;  %v3610_v19 = vsel %vm515_vm5, 1.0, %v7688_v0  ;;  %vm514_vm14 = vcmp.eq.s32.totalorder %v6646_v15, %v6643_v56  ;;  %3805 = vmatprep.subr.msk.mxu0 %vm515_vm5, %v7383_v46  ;;  %v3606_v22 = vsel %vm511_vm6, 1.0, %v7688_v0  ;;  %v6738_v13 = vsub.f32 %v3601_v58, %v3601_v58 }
 0x16f   :  { %4266 = vmatprep.subr.msk.mxu1 %vm338_vm10, %v7383_v46  ;;  %v6663_v10 = vsub.f32 %v3610_v19, %v3610_v19  ;;  %v3609_v6 = vsel %vm514_vm14, 1.0, %v7688_v0  ;;  %3806 = vmatpush1.msk.msra.mxu0 %vm514_vm14, %v7383_v46  ;;  %vm510_vm10 = vcmp.eq.s32.totalorder %v6651_v44, %v6643_v56  ;;  %v6691_v32 = vsub.f32 %v3606_v22, %v3606_v22 }
 0x170   :  { %4267 = vmatpush3.msk.msra.mxu1 %vm322_vm0, %v7383_v46  ;;  %v6678_v17 = vsub.f32 %v3609_v6, %v3609_v6  ;;  %3807 = vmatprep.subr.msk.mxu0 %vm511_vm6, %v7383_v46  ;;  %v3605_v14 = vsel %vm510_vm10, 1.0, %v7688_v0  ;;  %vm507_vm0 = vcmp.eq.s32.totalorder %v6672_v55, %v6639_v18  ;;  %v2508_v43 = vand.u32 4294901760, %v6738_v13 }
 0x171   :  { %4268 = vmatprep.subr.msk.mxu1 %vm7689_vm12, %v7383_v46  ;;  %v2478_v52 = vand.u32 4294901760, %v6663_v10  ;;  %3808 = vmatpush1.msk.msra.mxu0 %vm510_vm10, %v7383_v46  ;;  %v6704_v39 = vsub.f32 %v3605_v14, %v3605_v14  ;;  %v3602_v38 = vsel %vm507_vm0, 1.0, %v7688_v0  ;;  %v2490_v20 = vand.u32 4294901760, %v6691_v32 }
 0x172   :  { %4269 = vmatpush3.msk.msra.mxu1 %vm7690_vm7, %v7383_v46  ;;  %v2484_v30 = vand.u32 4294901760, %v6678_v17  ;;  %3809 = vmatprep.subr.msk.mxu0 %vm507_vm0, %v7383_v46  ;;  %v6718_v8 = vsub.f32 %v3602_v38, %v3602_v38  ;;  %v2509_v28 = vsub.f32 %v6738_v13, %v2508_v43  ;;  %v2514_v4 = vand.u32 4294901760, %v6759_v9 }
 0x173   :  { %2321 = vmatmul.mubr.f32.vlgmr.msra.gmra.mxu1 %v7687_v21  ;;  %v2479_v62 = vsub.f32 %v6663_v10, %v2478_v52  ;;  %v2496_v42 = vand.u32 4294901760, %v6704_v39  ;;  %3810 = vmatpush1.msk.msra.mxu0 %vm506_vm13, %v7383_v46  ;;  %v2491_v12 = vsub.f32 %v6691_v32, %v2490_v20  ;;  %v2520_v63 = vand.u32 4294901760, %v6772_v11 }
 0x174   :  { %2556 = vmatprep.mubr.f32.mxu1 %v7688_v0  ;;  %v2485_v51 = vsub.f32 %v6678_v17, %v2484_v30  ;;  %v2502_v50 = vand.u32 4294901760, %v6718_v8  ;;  %3811 = vmatprep.subr.msk.mxu0 %vm503_vm15, %v7383_v46  ;;  %v2510_v7 = vand.u32 4294901760, %v2509_v28  ;;  %v2515_v48 = vsub.f32 %v6759_v9, %v2514_v4 }
 0x175   :  { %v2480_v41 = vand.u32 4294901760, %v2479_v62  ;;  %v2497_v16 = vsub.f32 %v6704_v39, %v2496_v42  ;;  %v2492_v23 = vand.u32 4294901760, %v2491_v12  ;;  %3812 = vmatpush1.msk.msra.mxu0 %vm502_vm9, %v7383_v46  ;;  %v2521_v54 = vsub.f32 %v6772_v11, %v2520_v63 }
 0x176   :  { %v2486_v27 = vand.u32 4294901760, %v2485_v51  ;;  %v2503_v2 = vsub.f32 %v6718_v8, %v2502_v50  ;;  %2590 = vmatprep.subr.mxu0 %v6663_v10  ;;  %v2516_v57 = vand.u32 4294901760, %v2515_v48 }
 0x177   :  { %2481 = vmatprep.subr.mxu1 %v2480_v41  ;;  %v2498_v5 = vand.u32 4294901760, %v2497_v16  ;;  %v2522_v3 = vand.u32 4294901760, %v2521_v54 }
 0x178   :  { %2487 = vmatpush1.msra.mxu1 %v2486_v27  ;;  %v2504_v47 = vand.u32 4294901760, %v2503_v2 }
 0x179   :  { %2493 = vmatprep.subr.mxu1 %v2492_v23 }
 0x17a   :  { %2499 = vmatpush1.msra.mxu1 %v2498_v5 }
 0x17b   :  { %2505 = vmatprep.subr.mxu1 %v2504_v47 }
 0x17c   :  { %2511 = vmatpush1.msra.mxu1 %v2510_v7 }
 0x17d   :  { %2517 = vmatprep.subr.mxu1 %v2516_v57  ;;  %v3885_v34 = vpop.f32.mrf.mxu0 }
 0x17e   :  { %2523 = vmatpush1.msra.mxu1 %v2522_v3 }
 0x17f   :  { %3813 = vmatprep.subr.msk.mxu1 %vm515_vm5, %v7383_v46  ;;  %v3886_v60 = vpop.f32.mrf.mxu0 }
 0x180   :  { %v3887_v49 = vadd.f32 %v3886_v60, %v3885_v34 }
 0x186   :  { %v3920_v24 = vpop.f32.mrf.mxu1 }
 0x188   :  { %v3921_v1 = vpop.f32.mrf.mxu1 }
 0x189   :  { %v3922_v21 = vadd.f32 %v3921_v1, %v3920_v24  ;;  %v4352_v24 = vmov 1966171168  }
 0x18b   :  { %v943_v14 = vadd.f32 %v3922_v21, %v3887_v49 }
 0x19e   :  { %v3955_v37 = vpop.f32.mrf.mxu0 }
 0x1a0   :  { %v3956_v25 = vpop.f32.mrf.mxu0 }
 0x1a1   :  { %v3957_v19 = vadd.f32 %v3956_v25, %v3955_v37  ;;  %v2329_v37 = vunpack.c.l.s4 %v4352_v24 }
 0x1a3   :  { %v1081_v51 = vadd.f32 %v3957_v19, %v943_v14 }
 0x1a8   :  { %v3990_v31 = vpop.f32.mrf.mxu1 }
 0x1aa   :  { %v3991_v53 = vpop.f32.mrf.mxu1 }
 0x1ab   :  { %v3992_v38 = vadd.f32 %v3991_v53, %v3990_v31 }
 0x1ad   :  { %v1189_v12 = vadd.f32 %v3992_v38, %v1081_v51  ;;  %v92_v38 = vld [vmem:[%s7167_s4] sm:$0x1]  ;;  %s4353_s4 = smov [#allocation2]  }
 0x1ae   :  { %v7694_v51 = vld [vmem:[#allocation51_spill] sm:$0xff]  ;;  %s3498_s16 = sshll.u32 %s4353_s4, 4  ;;  %s3499_s16 = int_to_ptr.vmem [resolvable:$true] %s3498_s16 }
 0x1af   :  { %s4285_s17 = scalar_lea.vmem %s3499_s16, 64  ;;  %p4290_p1 = scmp.lt.s32.totalorder %s3499_s16, %s3499_s16 }
 0x1b0   :  { %p4286_p0 = scmp.ne.s32.totalorder %s3499_s16, %s4285_s17  ;;  %p4291_p2 = scmp.lt.s32.totalorder %s4285_s17, %s4285_s17 }
 0x1b2   :  { %p4292_p3 = por %p4291_p2, %p4290_p1 }
 0x1b4   :  { %p4293_p4 = pnand %p4292_p3, %p4286_p0 }
 0x1c1   :  { %v4025_v35 = vpop.f32.mrf.mxu0 }
 0x1c3   :  { %v4026_v29 = vpop.f32.mrf.mxu0 }
 0x1c4   :  { %v4027_v58 = vadd.f32 %v4026_v29, %v4025_v35  ;;  %v2330_v29 = vunpack.c.0.s8 %v2329_v37 }
 0x1c6   :  { %v1357_v2 = vadd.f32 %v4027_v58, %v1189_v12  ;;  %v6788_v21 = vsub.s32 %v2330_v29, %v7693_v61  ;;  %v6799_v58 = vrot.slane %v6635_v40, %v7694_v51  ;;  %v7695_v12 = vld [vmem:[#allocation27_spill] sm:$0xff] }
 0x1c8   :  { %vm517_vm4 = vcmp.eq.s32.totalorder %v6646_v15, %v6799_v58  ;;  %vm513_vm2 = vcmp.eq.s32.totalorder %v6651_v44, %v6799_v58  ;;  %vm509_vm12 = vcmp.eq.s32.totalorder %v6672_v55, %v6799_v58 }
 0x1cb   :  { %v4060_v26 = vpop.f32.mrf.mxu1 }
 0x1cd   :  { %v4061_v45 = vpop.f32.mrf.mxu1 }
 0x1ce   :  { %v4062_v27 = vadd.f32 %v4061_v45, %v4060_v26 }
 0x1d0   :  { %v1461_v59 = vadd.f32 %v4062_v27, %v1357_v2  ;;  %v6803_v27 = vrot.slane %v6635_v40, %v7695_v12  ;;  %v3612_v40 = vsel %vm517_vm4, 1.0, %v7688_v0 }
 0x1d2   :  { %vm516_vm3 = vcmp.eq.s32.totalorder %v6646_v15, %v6803_v27  ;;  %vm512_vm8 = vcmp.eq.s32.totalorder %v6651_v44, %v6803_v27  ;;  %vm508_vm7 = vcmp.eq.s32.totalorder %v6672_v55, %v6803_v27 }
 0x1e5   :  { %v4095_v33 = vpop.f32.mrf.mxu0 }
 0x1e7   :  { %v4096_v6 = vpop.f32.mrf.mxu0 }
 0x1e8   :  { %v4097_v36 = vadd.f32 %v4096_v6, %v4095_v33 }
 0x1ea   :  { %v1573_v7 = vadd.f32 %v4097_v36, %v1461_v59 }
 0x1f0   :  { %v4130_v22 = vpop.f32.mrf.mxu1 }
 0x1f2   :  { %v4131_v41 = vpop.f32.mrf.mxu1 }
 0x1f3   :  { %v4132_v47 = vadd.f32 %v4131_v41, %v4130_v22 }
 0x1f5   :  { %v1805_v57 = vadd.f32 %v4132_v47, %v1573_v7  ;;  %v3608_v47 = vsel %vm513_vm2, 1.0, %v7688_v0  ;;  %v3607_v7 = vsel %vm512_vm8, 1.0, %v7688_v0 }
 0x1f6   :  { %v6889_v24 = vsub.f32 %v3607_v7, %v3607_v7 }
 0x208   :  { %v4165_v62 = vpop.f32.mrf.mxu0 }
 0x20a   :  { %v4166_v16 = vpop.f32.mrf.mxu0 }
 0x20b   :  { %v4167_v48 = vadd.f32 %v4166_v16, %v4165_v62 }
 0x20d   :  { %v1943_v34 = vadd.f32 %v4167_v48, %v1805_v57  ;;  %v3604_v57 = vsel %vm509_vm12, 1.0, %v7688_v0 }
 0x212   :  { %v4200_v23 = vpop.f32.mrf.mxu1 }
 0x214   :  { %v4201_v28 = vpop.f32.mrf.mxu1 }
 0x215   :  { %v4202_v3 = vadd.f32 %v4201_v28, %v4200_v23  ;;  %v6851_v28 = vsub.f32 %v3612_v40, %v3612_v40 }
 0x217   :  { %v2051_v25 = vadd.f32 %v4202_v3, %v1943_v34  ;;  %v6877_v3 = vsub.f32 %v3608_v47, %v3608_v47  ;;  %v3603_v34 = vsel %vm508_vm7, 1.0, %v7688_v0 }
 0x219   :  { %v3033_v29 = vand.u32 4294901760, %v6877_v3 }
 0x22a   :  { %v4235_v5 = vpop.f32.mrf.mxu0 }
 0x22c   :  { %v4236_v54 = vpop.f32.mrf.mxu0 }
 0x22d   :  { %v4237_v60 = vadd.f32 %v4236_v54, %v4235_v5  ;;  %v3611_v5 = vsel %vm516_vm3, 1.0, %v7688_v0 }
 0x22e   :  { %v6865_v54 = vsub.f32 %v3611_v5, %v3611_v5 }
 0x22f   :  { %v2219_v35 = vadd.f32 %v4237_v60, %v2051_v25  ;;  %v6900_v25 = vsub.f32 %v3604_v57, %v3604_v57 }
 0x233   :  { %v4270_v1 = vpop.f32.mrf.mxu1 }
 0x235   :  { %v4271_v31 = vpop.f32.mrf.mxu1 }
 0x236   :  { %v4272_v53 = vadd.f32 %v4271_v31, %v4270_v1  ;;  %v3021_v1 = vand.u32 4294901760, %v6851_v28 }
 0x238   :  { %v2323_v26 = vadd.f32 %v4272_v53, %v2219_v35  ;;  %v3027_v35 = vand.u32 4294901760, %v6865_v54  ;;  %v6912_v53 = vsub.f32 %v3603_v34, %v3603_v34 }
 0x23a   :  { %v2326_v33 = vmax.f32 %v2323_v26, 1.0  ;;  %3491 = vst.msk [vmem:[#allocation6] sm:$0x1] %vm3490_vm1, %v2323_v26  ;;  %v2334_v6 = vrot.slane %v2323_v26, %v6788_v21  ;;  %vm505_vm1 = vcmp.eq.s32.totalorder %v7693_v61, %v6799_v58 }
 0x23b   :  { %v3600_v37 = vsel %vm505_vm1, 1.0, %v7688_v0 }
 0x23c   :  { %v2352_v45 = vrot.slane %v2326_v33, %v6788_v21  ;;  %v2335_v22 = vcombine.high %v2334_v6, %v2334_v6  ;;  %v6920_v26 = vsub.f32 %v3600_v37, %v3600_v37  ;;  %v3039_v33 = vand.u32 4294901760, %v6889_v24 }
 0x23d   :  { %v3028_v6 = vsub.f32 %v6865_v54, %v3027_v35 }
 0x23e   :  { %v2359_v49 = vrot.slane %v2352_v45, %v6788_v21  ;;  %v2342_v14 = vrot.slane %v2335_v22, %v6788_v21  ;;  %v3051_v22 = vand.u32 4294901760, %v6912_v53 }
 0x23f   :  { %v3029_v18 = vand.u32 4294901760, %v3028_v6 }
 0x240   :  { %v2360_v19 = vcombine.high %v2359_v49, %v2359_v49  ;;  %v2344_v62 = vsub.f32 %v92_v38, %v2342_v14  ;;  %v3022_v49 = vsub.f32 %v6851_v28, %v3021_v1  ;;  %v3034_v14 = vsub.f32 %v6877_v3, %v3033_v29 }
 0x241   :  { %v3057_v38 = vand.u32 4294901760, %v6920_v26 }
 0x242   :  { %4282 = vrcp.f32 %v2360_v19  ;;  %v3045_v19 = vand.u32 4294901760, %v6900_v25 }
 0x243   :  { %v3058_v40 = vsub.f32 %v6920_v26, %v3057_v38 }
 0x244   :  { %v3046_v12 = vsub.f32 %v6900_v25, %v3045_v19 }
 0x245   :  { %v3059_v10 = vand.u32 4294901760, %v3058_v40 }
 0x246   :  { %v3047_v47 = vand.u32 4294901760, %v3046_v12 }
 0x24f   :  { %v4283_v41 = vpop.eup %4282 }
 0x250   :  { %v2363_v16 = vmul.f32 %v4283_v41, %v2344_v62  ;;  %v3040_v62 = vsub.f32 %v6889_v24, %v3039_v33  ;;  %v3023_v41 = vand.u32 4294901760, %v3022_v49 }
 0x252   :  { %v2366_v23 = vsel %vm2364_vm11, %v2363_v16, 0  ;;  %vm504_vm11 = vcmp.eq.s32.totalorder %v7693_v61, %v6803_v27  ;;  %v3052_v16 = vsub.f32 %v6912_v53, %v3051_v22  ;;  %v3041_v56 = vand.u32 4294901760, %v3040_v62  ;;  %v7699_v61 = vld [vmem:[#allocation10_spill] sm:$0xff] }
 0x253   :  { %v6807_v2 = vand.u32 4294901760, %v2366_v23  ;;  %v3599_v31 = vsel %vm504_vm11, 1.0, %v7688_v0 }
 0x254   :  { %v6928_v45 = vsub.f32 %v3599_v31, %v3599_v31  ;;  %v3053_v7 = vand.u32 4294901760, %v3052_v16 }
 0x255   :  { %2558 = vmatmul.mubr.f32.vlgmr.msra.gmra.mxu1 %v6807_v2  ;;  %v6815_v36 = vsub.f32 %v2366_v23, %v6807_v2  ;;  %v3035_v23 = vand.u32 4294901760, %v3034_v14 }
 0x256   :  { %3814 = vmatpush1.msk.msra.mxu1 %vm514_vm14, %v7383_v46  ;;  %2725 = vmatprep.mubr.f32.mxu1 %v7688_v0  ;;  %v3063_v51 = vand.u32 4294901760, %v6928_v45 }
 0x257   :  { %3815 = vmatprep.subr.msk.mxu1 %vm511_vm6, %v7383_v46  ;;  %v6839_v59 = vand.u32 4294901760, %v6815_v36 }
 0x258   :  { %3816 = vmatpush1.msk.msra.mxu1 %vm510_vm10, %v7383_v46  ;;  %v3064_v5 = vsub.f32 %v6928_v45, %v3063_v51 }
 0x259   :  { %3817 = vmatprep.subr.msk.mxu1 %vm507_vm0, %v7383_v46  ;;  %v2444_v48 = vsub.f32 %v6815_v36, %v6839_v59 }
 0x25a   :  { %3818 = vmatpush1.msk.msra.mxu1 %vm506_vm13, %v7383_v46 }
 0x25b   :  { %3819 = vmatprep.subr.msk.mxu1 %vm503_vm15, %v7383_v46  ;;  %v6887_v60 = vand.u32 4294901760, %v2444_v48 }
 0x25c   :  { %3820 = vmatpush1.msk.msra.mxu1 %vm502_vm9, %v7383_v46 }
 0x25d   :  { %2729 = vmatmul.mubr.f32.vlgmr.msra.gmra.mxu1 %v6839_v59  ;;  %3821 = vmatprep.subr.msk.mxu1 %vm515_vm5, %v7383_v46 }
 0x25e   :  { %2446 = vmatmul.mubr.f32.vlgmr.msra.gmra.mxu0 %v6887_v60  ;;  %3822 = vmatpush1.msk.msra.mxu1 %vm514_vm14, %v7383_v46 }
 0x25f   :  { %2593 = vmatpush1.msra.mxu0 %v6678_v17  ;;  %3823 = vmatprep.subr.msk.mxu1 %vm511_vm6, %v7383_v46 }
 0x260   :  { %2596 = vmatprep.subr.mxu0 %v6691_v32  ;;  %3824 = vmatpush1.msk.msra.mxu1 %vm510_vm10, %v7383_v46 }
 0x261   :  { %2599 = vmatpush1.msra.mxu0 %v6704_v39  ;;  %3825 = vmatprep.subr.msk.mxu1 %vm507_vm0, %v7383_v46 }
 0x262   :  { %2602 = vmatprep.subr.mxu0 %v6718_v8  ;;  %3826 = vmatpush1.msk.msra.mxu1 %vm506_vm13, %v7383_v46 }
 0x263   :  { %2605 = vmatpush1.msra.mxu0 %v6738_v13  ;;  %3827 = vmatprep.subr.msk.mxu1 %vm503_vm15, %v7383_v46 }
 0x264   :  { %2608 = vmatprep.subr.mxu0 %v6759_v9  ;;  %2644 = vmatprep.mubr.f32.mxu0 %v7688_v0 }
 0x265   :  { %2611 = vmatpush1.msra.mxu0 %v6772_v11  ;;  %3828 = vmatpush1.msk.msra.mxu1 %vm502_vm9, %v7383_v46 }
 0x266   :  { %2903 = vmatprep.mubr.f32.mxu1 %v7688_v0  ;;  %2647 = vmatmul.mubr.f32.vlgmr.msra.gmra.mxu0 %v6815_v36 }
 0x267   :  { %2762 = vmatprep.subr.mxu0 %v2478_v52  ;;  %2905 = vmatmul.mubr.f32.vlgmr.msra.gmra.mxu1 %v6807_v2  ;;  %v3065_v52 = vand.u32 4294901760, %v3064_v5 }
 0x268   :  { %3024 = vmatprep.subr.mxu1 %v3023_v41  ;;  %2766 = vmatpush1.msra.mxu0 %v2484_v30 }
 0x269   :  { %3030 = vmatpush1.msra.mxu1 %v3029_v18  ;;  %2770 = vmatprep.subr.mxu0 %v2490_v20 }
 0x26a   :  { %3036 = vmatprep.subr.mxu1 %v3035_v23  ;;  %2774 = vmatpush1.msra.mxu0 %v2496_v42 }
 0x26b   :  { %3042 = vmatpush1.msra.mxu1 %v3041_v56  ;;  %2778 = vmatprep.subr.mxu0 %v2502_v50 }
 0x26c   :  { %3048 = vmatprep.subr.mxu1 %v3047_v47  ;;  %2782 = vmatpush1.msra.mxu0 %v2508_v43 }
 0x26d   :  { %3054 = vmatpush1.msra.mxu1 %v3053_v7  ;;  %2786 = vmatprep.subr.mxu0 %v2514_v4 }
 0x26e   :  { %3060 = vmatprep.subr.mxu1 %v3059_v10  ;;  %2790 = vmatpush1.msra.mxu0 %v2520_v63 }
 0x26f   :  { %2823 = vmatprep.mubr.f32.mxu0 %v7688_v0  ;;  %3066 = vmatpush1.msra.mxu1 %v3065_v52 }
 0x270   :  { %3099 = vmatprep.mubr.f32.mxu1 %v7688_v0  ;;  %2825 = vmatmul.mubr.f32.vlgmr.msra.gmra.mxu0 %v6807_v2 }
 0x271   :  { %3829 = vmatprep.subr.msk.mxu0 %vm517_vm4, %v7383_v46  ;;  %3101 = vmatmul.mubr.f32.vlgmr.msra.gmra.mxu1 %v6807_v2 }
 0x272   :  { %3837 = vmatprep.subr.msk.mxu1 %vm517_vm4, %v7383_v46  ;;  %3830 = vmatpush1.msk.msra.mxu0 %vm516_vm3, %v7383_v46 }
 0x273   :  { %3838 = vmatpush1.msk.msra.mxu1 %vm516_vm3, %v7383_v46  ;;  %3831 = vmatprep.subr.msk.mxu0 %vm513_vm2, %v7383_v46 }
 0x274   :  { %3839 = vmatprep.subr.msk.mxu1 %vm513_vm2, %v7383_v46  ;;  %3832 = vmatpush1.msk.msra.mxu0 %vm512_vm8, %v7383_v46 }
 0x275   :  { %3840 = vmatpush1.msk.msra.mxu1 %vm512_vm8, %v7383_v46  ;;  %3833 = vmatprep.subr.msk.mxu0 %vm509_vm12, %v7383_v46 }
 0x276   :  { %3841 = vmatprep.subr.msk.mxu1 %vm509_vm12, %v7383_v46  ;;  %3834 = vmatpush1.msk.msra.mxu0 %vm508_vm7, %v7383_v46 }
 0x277   :  { %3842 = vmatpush1.msk.msra.mxu1 %vm508_vm7, %v7383_v46  ;;  %3835 = vmatprep.subr.msk.mxu0 %vm505_vm1, %v7383_v46 }
 0x278   :  { %3843 = vmatprep.subr.msk.mxu1 %vm505_vm1, %v7383_v46  ;;  %3836 = vmatpush1.msk.msra.mxu0 %vm504_vm11, %v7383_v46 }
 0x279   :  { %2983 = vmatprep.mubr.f32.mxu0 %v7688_v0  ;;  %3844 = vmatpush1.msk.msra.mxu1 %vm504_vm11, %v7383_v46 }
 0x27a   :  { %3268 = vmatprep.mubr.f32.mxu1 %v7688_v0  ;;  %2989 = vmatmul.mubr.f32.vlgmr.msra.gmra.mxu0 %v6887_v60 }
 0x27b   :  { %3133 = vmatprep.subr.mxu0 %v6851_v28  ;;  %3272 = vmatmul.mubr.f32.vlgmr.msra.gmra.mxu1 %v6839_v59 }
 0x27c   :  { %3845 = vmatprep.subr.msk.mxu1 %vm517_vm4, %v7383_v46  ;;  %3136 = vmatpush1.msra.mxu0 %v6865_v54 }
 0x27d   :  { %3846 = vmatpush1.msk.msra.mxu1 %vm516_vm3, %v7383_v46  ;;  %3139 = vmatprep.subr.mxu0 %v6877_v3 }
 0x27e   :  { %3847 = vmatprep.subr.msk.mxu1 %vm513_vm2, %v7383_v46  ;;  %3142 = vmatpush1.msra.mxu0 %v6889_v24 }
 0x27f   :  { %3848 = vmatpush1.msk.msra.mxu1 %vm512_vm8, %v7383_v46  ;;  %3145 = vmatprep.subr.mxu0 %v6900_v25 }
 0x280   :  { %3849 = vmatprep.subr.msk.mxu1 %vm509_vm12, %v7383_v46  ;;  %3148 = vmatpush1.msra.mxu0 %v6912_v53 }
 0x281   :  { %3850 = vmatpush1.msk.msra.mxu1 %vm508_vm7, %v7383_v46  ;;  %3151 = vmatprep.subr.mxu0 %v6920_v26 }
 0x282   :  { %3851 = vmatprep.subr.msk.mxu1 %vm505_vm1, %v7383_v46  ;;  %3154 = vmatpush1.msra.mxu0 %v6928_v45 }
 0x283   :  { %3187 = vmatprep.mubr.f32.mxu0 %v7688_v0  ;;  %3852 = vmatpush1.msk.msra.mxu1 %vm504_vm11, %v7383_v46  ;;  %v7696_v46 = vlaneseq }
 0x284   :  { %3446 = vmatprep.mubr.f32.mxu1 %v7688_v0  ;;  %3190 = vmatmul.mubr.f32.vlgmr.msra.gmra.mxu0 %v6815_v36 }
 0x285   :  { %3305 = vmatprep.subr.mxu0 %v3021_v1  ;;  %3448 = vmatmul.mubr.f32.vlgmr.msra.gmra.mxu1 %v6807_v2  ;;  %vm7139_vm5 = vcmp.lt.s32.totalorder %v7696_v46, 512 }
 0x286   :  { %3309 = vmatpush1.msra.mxu0 %v3027_v35  ;;  %3366 = vmatprep.mubr.f32.mxu0 %v7688_v0  ;;  %3458 = vst.msk [vmem:[#allocation2] sm:$0xf] %vm7139_vm5, %v7699_v61 }
 0x287   :  { %3313 = vmatprep.subr.mxu0 %v3033_v29 }
 0x288   :  { %3317 = vmatpush1.msra.mxu0 %v3039_v33 }
 0x289   :  { %3321 = vmatprep.subr.mxu0 %v3045_v19 }
 0x28a   :  { %3325 = vmatpush1.msra.mxu0 %v3051_v22 }
 0x28b   :  { %3329 = vmatprep.subr.mxu0 %v3057_v38 }
 0x28c   :  { %3333 = vmatpush1.msra.mxu0 %v3063_v51 }
 0x28d   :  { %3368 = vmatmul.mubr.f32.vlgmr.msra.gmra.mxu0 %v6807_v2 }
 0x28e   :  { %4296 = shalt.err (!%p4293_p4)
}
 0x28f   :  { %3501 = dma.vmem_to_hbm [thread:$0]  %s3499_s16, 64, %s7168_s5, [#allocation3]   ;;  %v4284_v18 = vld [vmem:[%s7164_s1] sm:$0xf] }
 0x290   :  { %s4354_s5 = smov [#allocation4]   ;;  %s4355_s21 = smov [#allocation6]  }
 0x291   :  { %s3508_s20 = sshll.u32 %s4354_s5, 4  ;;  %s3518_s22 = sshll.u32 %s4355_s21, 4  ;;  %s3509_s20 = int_to_ptr.vmem [resolvable:$true] %s3508_s20  ;;  %s3519_s22 = int_to_ptr.vmem [resolvable:$true] %s3518_s22 }
 0x292   :  { %s4305_s25 = scalar_lea.vmem %s3509_s20, 64  ;;  %p4310_p6 = scmp.lt.s32.totalorder %s3509_s20, %s3509_s20 }
 0x293   :  { %p4306_p5 = scmp.ne.s32.totalorder %s3509_s20, %s4305_s25  ;;  %p4311_p7 = scmp.lt.s32.totalorder %s4305_s25, %s4305_s25 }
 0x295   :  { %p4312_p8 = por %p4311_p7, %p4310_p6 }
 0x297   :  { %p4313_p9 = pnand %p4312_p8, %p4306_p5 }
 0x315   :  { %v2559_v44 = vpop.f32.mrf.mxu1 }
 0x317   :  { %v2561_v32 = vpop.f32.mrf.mxu1 }
 0x31d   :  { %v2730_v30 = vpop.f32.mrf.mxu1 }
 0x31e   :  { %v2447_v15 = vpop.f32.mrf.mxu0 }
 0x31f   :  { %v2732_v8 = vpop.f32.mrf.mxu1  ;;  %v2560_v63 = vadd.f32 %v2559_v44, %v2447_v15 }
 0x320   :  { %v2449_v55 = vpop.f32.mrf.mxu0 }
 0x321   :  { %v2562_v11 = vadd.f32 %v2561_v32, %v2449_v55 }
 0x326   :  { %v2648_v17 = vpop.f32.mrf.mxu0 }
 0x327   :  { %v2906_v42 = vpop.f32.mrf.mxu1  ;;  %v2649_v36 = vadd.f32 %v2648_v17, %v2560_v63 }
 0x328   :  { %v2650_v39 = vpop.f32.mrf.mxu0 }
 0x329   :  { %v2908_v43 = vpop.f32.mrf.mxu1  ;;  %v2651_v58 = vadd.f32 %v2650_v39, %v2562_v11  ;;  %v2731_v34 = vadd.f32 %v2730_v30, %v2649_v36 }
 0x32b   :  { %v2733_v54 = vadd.f32 %v2732_v8, %v2651_v58 }
 0x330   :  { %v2826_v20 = vpop.f32.mrf.mxu0 }
 0x331   :  { %v3102_v9 = vpop.f32.mrf.mxu1  ;;  %v2827_v1 = vadd.f32 %v2826_v20, %v2731_v34 }
 0x332   :  { %v2828_v50 = vpop.f32.mrf.mxu0 }
 0x333   :  { %v3104_v2 = vpop.f32.mrf.mxu1  ;;  %v2829_v60 = vadd.f32 %v2828_v50, %v2733_v54  ;;  %v2907_v45 = vadd.f32 %v2906_v42, %v2827_v1 }
 0x335   :  { %v2909_v53 = vadd.f32 %v2908_v43, %v2829_v60 }
 0x337   :  { %v3463_v6 = vcombine.low %v2907_v45, %v2909_v53 }
 0x339   :  { %v3471_v62 = vrot.slane %v3463_v6, %v6788_v21 }
 0x33a   :  { %v2990_v13 = vpop.f32.mrf.mxu0 }
 0x33b   :  { %v3103_v59 = vadd.f32 %v3102_v9, %v2990_v13  ;;  %v3273_v28 = vpop.f32.mrf.mxu1 }
 0x33c   :  { %v2992_v4 = vpop.f32.mrf.mxu0 }
 0x33d   :  { %v3105_v57 = vadd.f32 %v3104_v2, %v2992_v4  ;;  %v3275_v37 = vpop.f32.mrf.mxu1 }
 0x344   :  { %v3191_v27 = vpop.f32.mrf.mxu0 }
 0x345   :  { %v3192_v3 = vadd.f32 %v3191_v27, %v3103_v59  ;;  %v3449_v31 = vpop.f32.mrf.mxu1 }
 0x346   :  { %v3193_v48 = vpop.f32.mrf.mxu0 }
 0x347   :  { %v3194_v24 = vadd.f32 %v3193_v48, %v3105_v57  ;;  %v3274_v25 = vadd.f32 %v3273_v28, %v3192_v3  ;;  %v3451_v19 = vpop.f32.mrf.mxu1 }
 0x349   :  { %v3276_v26 = vadd.f32 %v3275_v37, %v3194_v24 }
 0x34d   :  { %v3369_v35 = vpop.f32.mrf.mxu0 }
 0x34e   :  { %v3370_v29 = vadd.f32 %v3369_v35, %v3274_v25 }
 0x34f   :  { %v3371_v33 = vpop.f32.mrf.mxu0 }
 0x350   :  { %v3372_v49 = vadd.f32 %v3371_v33, %v3276_v26  ;;  %v3450_v22 = vadd.f32 %v3449_v31, %v3370_v29 }
 0x352   :  { %v3452_v14 = vadd.f32 %v3451_v19, %v3372_v49 }
 0x354   :  { %v3464_v38 = vcombine.low %v3450_v22, %v3452_v14 }
 0x356   :  { %v3478_v51 = vrot.slane %v3464_v38, %v6788_v21 }
 0x358   :  { %v3479_v41 = vcombine.low %v3471_v62, %v3478_v51 }
 0x35a   :  { %v3486_v12 = vrot.slane %v3479_v41, %v6788_v21 }
 0x35c   :  { %v3488_v16 = vadd.f32 %v4284_v18, %v3486_v12 }
 0x35e   :  { %3489 = vst.msk [vmem:[#allocation4] sm:$0xf] %vm7139_vm5, %v3488_v16 }
 0x35f   :  { %4316 = shalt.err (!%p4313_p9)
}
 0x360   :  { %3511 = dma.vmem_to_hbm [thread:$0]  %s3509_s20, 64, %s7169_s6, [#allocation5]  }
 0x361   :  { %s4325_s28 = scalar_lea.vmem %s3519_s22, 16  ;;  %s4329_s1 = scalar_lea.vmem %s3519_s22, 32 }
 0x362   :  { %p4326_p10 = scmp.ne.s32.totalorder %s3519_s22, %s4325_s28  ;;  %p4330_p11 = scmp.lt.s32.totalorder %s3519_s22, %s3519_s22 }
 0x363   :  { %p4331_p12 = scmp.lt.s32.totalorder %s4329_s1, %s4325_s28 }
 0x365   :  { %p4332_p13 = por %p4331_p12, %p4330_p11 }
 0x367   :  { %p4333_p0 = pnand %p4332_p13, %p4326_p10 }
 0x369   :  { %4336 = shalt.err (!%p4333_p0)
}
 0x36a   :  { %3521 = dma.vmem_to_hbm [thread:$0]  %s3519_s22, 16, %s7170_s7, [#allocation5]  }
 0x36b   :  { %4345 = dma.done.wait [#allocation3], 64  }
 0x36c   :  { %4346 = vsyncadd [#allocation3], 4294967232 }
 0x36d   :  { %4347 = dma.done.wait [#allocation5], 80  }
 0x36e   :  { %4348 = vsyncadd [#allocation5], 4294967216 }
 0x36f   :  { %3531 = vsyncpa [#allocation3], 1 }
 0x370   :  { %3532 = vsyncpa [#allocation5], 1 }

</bundles_post_ra>
